<compile_context>
chip_gen: v5e
topology: v5e:2x2
jax: 0.10.0
libtpu: 0.0.40
codegen_flags: <defaults>
</compile_context>

<pallas_src>
import functools

import jax
import jax.numpy as jnp
from jax.experimental import pallas as pl
from jax.experimental.pallas import tpu as pltpu

NEG_SLOPE = 0.1
EPS = 1e-5


# ---------------------------------------------------------------------------
# Fused kernel: 1x1 conv(+folded BN) + LReLU  ->  3x3 conv(+folded BN) + LReLU
#               -> +residual.  One (batch, row-tile) window per grid step.
# ---------------------------------------------------------------------------
def _cbr_fused_kernel(x_ref, mask_ref, w1_ref, w2_ref,
                      b1_ref, b2_ref, o_ref, *, W, TH):
    # x_ref   : (1, (TH+3)*Wp, Cin) f32  -- flattened, spatially padded window
    # mask_ref: (1, (TH+3)*Wp, 1)   f32  -- 1 on real pixels, 0 on the pad ring
    # w1_ref  : (Cin, C1)   bf16         -- BN1 scale folded in
    # w2_ref  : (9, C1, C2) bf16         -- tap-major 3x3 weights, BN2 folded in
    # b*      : (1, C1) / (1, C2) f32    -- folded BatchNorm biases
    # o_ref   : (1, 1, TH*Wp, C2) f32    -- padded-width output tile
    Wp = W + 2
    M = TH * Wp

    x = x_ref[0]                                     # ((TH+3)*Wp, Cin) f32

    # ---- stage 1: 1x1 conv (bf16 MXU, f32 acc) + bias + LeakyReLU ----------
    y = jnp.dot(x.astype(jnp.bfloat16), w1_ref[...],
                preferred_element_type=jnp.float32)  # ((TH+3)*Wp, C1) f32
    y = y + b1_ref[...]
    y = jnp.where(y > 0, y, NEG_SLOPE * y)
    # zero conv2's zero-padding ring (precomputed mask keeps halo rows alive)
    y = (y * mask_ref[0]).astype(jnp.bfloat16)

    # ---- stage 2: 3x3 conv as 9 accumulating matmuls on CONTIGUOUS slices --
    # TODO(synk): when C1 is small, lane-concatenate the 9 taps into a single
    # K=9*C1 matmul (needs unaligned minor-dim concat); for production channel
    # counts (C1 >= 128) each K=C1 dot already fills the MXU contraction dim.
    acc = jnp.dot(y[0:M, :], w2_ref[0], preferred_element_type=jnp.float32)
    for ky in range(3):
        for kx in range(3):
            if ky == 0 and kx == 0:
                continue
            d = ky * Wp + kx
            acc = acc + jnp.dot(y[d:d + M, :], w2_ref[ky * 3 + kx],
                                preferred_element_type=jnp.float32)
    acc = acc + b2_ref[...]
    acc = jnp.where(acc > 0, acc, NEG_SLOPE * acc)

    # residual add straight from the interior of the x window (Cin == C2)
    o_ref[0, 0] = acc + x[Wp + 1:Wp + 1 + M, :]


# ---------------------------------------------------------------------------
# Row-tile picker: largest divisor of H whose per-step working set fits a
# conservative VMEM budget (safe for v7x's 32 MiB scoped / 64 MiB physical).
# ---------------------------------------------------------------------------
def _pick_row_tile(H, Wp, Cin, C1, C2, budget_bytes=4 << 20):
    best = None
    for th in range(1, H + 1):
        if H % th:
            continue
        r = th + 3
        approx = (r * Wp * Cin * 4 * 2      # x window (f32, double-buffered)
                  + r * Wp * C1 * 6         # stage-1 activations (f32 + bf16)
                  + th * Wp * C2 * 4 * 3)   # accumulator + double-buffered out
        if approx <= budget_bytes or best is None:
            best = th
    return best


# ---------------------------------------------------------------------------
# Wrapper
# ---------------------------------------------------------------------------
def cbr_forward(x_nchw, w1, scale1, bias1, w2, scale2, bias2, *, row_tile=None):
    """x_nchw: (N, Cin, H, W).  w1: (Cin, C1).  w2: (3, 3, C1, C2)."""
    N, Cin, H, W = x_nchw.shape
    C1 = w1.shape[1]
    C2 = w2.shape[3]
    assert C2 == Cin, "residual add requires planes[1] == inplanes"
    Wp = W + 2

    TH = row_tile if row_tile is not None else _pick_row_tile(H, Wp, Cin, C1, C2)
    assert H % TH == 0, "row_tile must divide H"
    nH = H // TH
    R = TH + 3  # rows per window: 1 top halo + TH + 1 bottom halo + 1 slack row

    # NHWC + zero pad (1 top, 2 bottom, 1 left, 1 right), then gather the
    # overlapping per-tile row windows pre-flattened so the kernel never
    # reshapes.  XLA fuses transpose+pad+gather into a single pass over x.
    x_nhwc = jnp.transpose(x_nchw, (0, 2, 3, 1)).astype(jnp.float32)
    x_pad = jnp.pad(x_nhwc, ((0, 0), (1, 2), (1, 1), (0, 0)))      # (N, H+3, Wp, Cin)
    x_halo = jnp.stack([x_pad[:, i * TH:i * TH + R] for i in range(nH)], axis=1)
    x_halo = x_halo.reshape(N * nH, R * Wp, Cin)

    # keep-mask over each flattened window: 1 on real pixels, 0 on the pad ring
    p = jnp.arange(R * Wp)
    lr = p // Wp
    cw = p % Wp
    grow = lr[None, :] + (jnp.arange(nH) * TH)[:, None]            # global padded row
    keep = (grow >= 1) & (grow <= H) & (cw[None, :] >= 1) & (cw[None, :] <= W)
    keep_mask = keep.astype(jnp.float32)[:, :, None]               # (nH, R*Wp, 1)

    # Fold the BatchNorm (eval) scales directly into the conv weights; only an
    # additive bias is left for the kernel epilogues.
    w1_b = (w1.astype(jnp.float32) * scale1.reshape(1, C1)).astype(jnp.bfloat16)
    w2_b = (w2.astype(jnp.float32) * scale2.reshape(1, 1, 1, C2))
    w2_b = w2_b.reshape(9, C1, C2).astype(jnp.bfloat16)            # tap-major

    kernel = functools.partial(_cbr_fused_kernel, W=W, TH=TH)
    out_flat = pl.pallas_call(
        kernel,
        out_shape=jax.ShapeDtypeStruct((N, nH, TH * Wp, C2), jnp.float32),
        grid=(N, nH),
        in_specs=[
            pl.BlockSpec((1, R * Wp, Cin), lambda n, i: (n * nH + i, 0, 0)),
            pl.BlockSpec((1, R * Wp, 1), lambda n, i: (i, 0, 0)),
            pl.BlockSpec((Cin, C1), lambda n, i: (0, 0)),
            pl.BlockSpec((9, C1, C2), lambda n, i: (0, 0, 0)),
            pl.BlockSpec((1, C1), lambda n, i: (0, 0)),
            pl.BlockSpec((1, C2), lambda n, i: (0, 0)),
        ],
        out_specs=pl.BlockSpec((1, 1, TH * Wp, C2), lambda n, i: (n, i, 0, 0)),
        compiler_params=pltpu.CompilerParams(
            dimension_semantics=("parallel", "parallel"),
            vmem_limit_bytes=32 * 1024 * 1024),
    )(x_halo, keep_mask, w1_b, w2_b,
      bias1.reshape(1, C1).astype(jnp.float32),
      bias2.reshape(1, C2).astype(jnp.float32))

    # (N, nH, TH, Wp, C2): drop the 2 garbage columns -> (N, H, W, C2) -> NCHW
    out = out_flat.reshape(N, nH, TH, Wp, C2)[:, :, :, :W, :]
    out = out.reshape(N, H, W, C2)
    return jnp.transpose(out, (0, 3, 1, 2))


# ---------------------------------------------------------------------------
# Pure-JAX f32 reference (correctness check only)
# ---------------------------------------------------------------------------
def ref_forward(x_nchw, w1, g1, b1, rm1, rv1, w2, g2, b2, rm2, rv2):
    x = jnp.transpose(x_nchw, (0, 2, 3, 1)).astype(jnp.float32)
    y = jnp.einsum('nhwc,cd->nhwd', x, w1)
    y = (y - rm1) / jnp.sqrt(rv1 + EPS) * g1 + b1
    y = jnp.where(y > 0, y, NEG_SLOPE * y)
    yp = jnp.pad(y, ((0, 0), (1, 1), (1, 1), (0, 0)))
    H, W = x.shape[1], x.shape[2]
    out = jnp.zeros(x.shape[:3] + (w2.shape[3],), jnp.float32)
    for ky in range(3):
        for kx in range(3):
            out = out + jnp.einsum('nhwc,cd->nhwd',
                                   yp[:, ky:ky + H, kx:kx + W, :], w2[ky, kx])
    out = (out - rm2) / jnp.sqrt(rv2 + EPS) * g2 + b2
    out = jnp.where(out > 0, out, NEG_SLOPE * out)
    out = out + x
    return jnp.transpose(out, (0, 3, 1, 2))


if __name__ == "__main__":
    key = jax.random.PRNGKey(0)
    N, Cin, H, W = 2, 4, 16, 16
    planes = (8, 4)  # planes[1] must equal inplanes for the residual add
    C1, C2 = planes

    keys = jax.random.split(key, 12)
    x = jax.random.normal(keys[0], (N, Cin, H, W), jnp.float32)

    # Conv weights (channels-last storage of the PyTorch (Cout, Cin, kh, kw))
    w1 = jax.random.normal(keys[1], (Cin, C1), jnp.float32) * 0.2
    w2 = jax.random.normal(keys[2], (3, 3, C1, C2), jnp.float32) * 0.1

    # BatchNorm params (eval semantics: running stats)
    g1 = jax.random.uniform(keys[3], (C1,), jnp.float32, 0.5, 1.5)
    b1 = jax.random.normal(keys[4], (C1,), jnp.float32) * 0.1
    rm1 = jax.random.normal(keys[5], (C1,), jnp.float32) * 0.1
    rv1 = jax.random.uniform(keys[6], (C1,), jnp.float32, 0.5, 1.5)
    g2 = jax.random.uniform(keys[7], (C2,), jnp.float32, 0.5, 1.5)
    b2 = jax.random.normal(keys[8], (C2,), jnp.float32) * 0.1
    rm2 = jax.random.normal(keys[9], (C2,), jnp.float32) * 0.1
    rv2 = jax.random.uniform(keys[10], (C2,), jnp.float32, 0.5, 1.5)

    # Fold BN (eval) into per-channel scale/bias
    scale1 = g1 / jnp.sqrt(rv1 + EPS)
    bias1 = b1 - rm1 * scale1
    scale2 = g2 / jnp.sqrt(rv2 + EPS)
    bias2 = b2 - rm2 * scale2

    cbr = jax.jit(cbr_forward, static_argnames=("row_tile",))
    # row_tile=8 -> grid (2, 2): exercises the row-tiled, multi-step pipeline.
    out = jax.block_until_ready(
        cbr(x, w1, scale1, bias1, w2, scale2, bias2, row_tile=8))
    ref = ref_forward(x, w1, g1, b1, rm1, rv1, w2, g2, b2, rm2, rv2)

    assert out.shape == (N, Cin, H, W)
    max_err = float(jnp.max(jnp.abs(out - ref)))
    assert jnp.allclose(out, ref, atol=3e-2, rtol=3e-2), (
        "mismatch vs reference: max abs err = %e" % max_err)
    print("KERNEL_OK")
</pallas_src>

<mosaic_0001>
module attributes {stable_mosaic.version = 11 : i64} {
  func.func @_cbr_fused_kernel(%arg0: i32, %arg1: i32, %arg2: memref<1x198x4xf32, #tpu.memory_space<vmem>>, %arg3: memref<1x198x1xf32, #tpu.memory_space<vmem>>, %arg4: memref<4x8xbf16, #tpu.memory_space<vmem>>, %arg5: memref<9x8x4xbf16, #tpu.memory_space<vmem>>, %arg6: memref<1x8xf32, #tpu.memory_space<vmem>>, %arg7: memref<1x4xf32, #tpu.memory_space<vmem>>, %arg8: memref<1x1x144x4xf32, #tpu.memory_space<vmem>>) attributes {dimension_semantics = [#tpu.dimension_semantics<parallel>, #tpu.dimension_semantics<parallel>], iteration_bounds = array<i64: 2, 2>, scalar_prefetch = 0 : i64, scratch_operands = 0 : i64, tpu.core_type = #tpu.core_type<tc>, window_params = [{transform_indices = @transform_0, window_bounds = array<i64: 1, 198, 4>}, {transform_indices = @transform_1, window_bounds = array<i64: 1, 198, 1>}, {pipeline_mode = #tpu.pipeline_mode<synchronous>, transform_indices = @transform_2, window_bounds = array<i64: 4, 8>}, {pipeline_mode = #tpu.pipeline_mode<synchronous>, transform_indices = @transform_3, window_bounds = array<i64: 9, 8, 4>}, {pipeline_mode = #tpu.pipeline_mode<synchronous>, transform_indices = @transform_4, window_bounds = array<i64: 1, 8>}, {pipeline_mode = #tpu.pipeline_mode<synchronous>, transform_indices = @transform_5, window_bounds = array<i64: 1, 4>}, {transform_indices = @transform_6, window_bounds = array<i64: 1, 1, 144, 4>}]} {
    %c0 = arith.constant 0 : index
    %c0_0 = arith.constant 0 : index
    %c0_1 = arith.constant 0 : index
    %0 = vector.load %arg2[%c0, %c0_0, %c0_1] : memref<1x198x4xf32, #tpu.memory_space<vmem>>, vector<1x198x4xf32>
    %1 = vector.shape_cast %0 : vector<1x198x4xf32> to vector<198x4xf32>
    %2 = arith.truncf %1 : vector<198x4xf32> to vector<198x4xbf16>
    %c0_2 = arith.constant 0 : index
    %c0_3 = arith.constant 0 : index
    %3 = vector.load %arg4[%c0_2, %c0_3] : memref<4x8xbf16, #tpu.memory_space<vmem>>, vector<4x8xbf16>
    %cst = arith.constant dense<0.000000e+00> : vector<198x8xf32>
    %4 = tpu.matmul %2, %3, %cst {dimension_numbers = #tpu.dot_dimension_numbers<[1], [0], [0], [1], [0, 0, 1, 1], [], []>} : vector<198x4xbf16>, vector<4x8xbf16>, vector<198x8xf32> -> vector<198x8xf32>
    %c0_4 = arith.constant 0 : index
    %c0_5 = arith.constant 0 : index
    %5 = vector.load %arg6[%c0_4, %c0_5] : memref<1x8xf32, #tpu.memory_space<vmem>>, vector<1x8xf32>
    %6 = vector.broadcast %5 : vector<1x8xf32> to vector<198x8xf32>
    %7 = arith.addf %4, %6 : vector<198x8xf32>
    %cst_6 = arith.constant 0.000000e+00 : f32
    %8 = vector.broadcast %cst_6 : f32 to vector<198x8xf32>
    %9 = arith.cmpf ogt, %7, %8 : vector<198x8xf32>
    %cst_7 = arith.constant 1.000000e-01 : f32
    %10 = vector.broadcast %cst_7 : f32 to vector<198x8xf32>
    %11 = arith.mulf %10, %7 : vector<198x8xf32>
    %12 = arith.select %9, %7, %11 : vector<198x8xi1>, vector<198x8xf32>
    %c0_8 = arith.constant 0 : index
    %c0_9 = arith.constant 0 : index
    %c0_10 = arith.constant 0 : index
    %13 = vector.load %arg3[%c0_8, %c0_9, %c0_10] : memref<1x198x1xf32, #tpu.memory_space<vmem>>, vector<1x198x1xf32>
    %14 = vector.shape_cast %13 : vector<1x198x1xf32> to vector<198x1xf32>
    %15 = vector.broadcast %14 : vector<198x1xf32> to vector<198x8xf32>
    %16 = arith.mulf %12, %15 : vector<198x8xf32>
    %17 = arith.truncf %16 : vector<198x8xf32> to vector<198x8xbf16>
    %18 = vector.extract_strided_slice %17 {offsets = [0, 0], sizes = [144, 8], strides = [1, 1]} : vector<198x8xbf16> to vector<144x8xbf16>
    %c0_11 = arith.constant 0 : index
    %c0_12 = arith.constant 0 : index
    %c0_13 = arith.constant 0 : index
    %19 = vector.load %arg5[%c0_11, %c0_12, %c0_13] : memref<9x8x4xbf16, #tpu.memory_space<vmem>>, vector<1x8x4xbf16>
    %20 = vector.shape_cast %19 : vector<1x8x4xbf16> to vector<8x4xbf16>
    %cst_14 = arith.constant dense<0.000000e+00> : vector<144x4xf32>
    %21 = tpu.matmul %18, %20, %cst_14 {dimension_numbers = #tpu.dot_dimension_numbers<[1], [0], [0], [1], [0, 0, 1, 1], [], []>} : vector<144x8xbf16>, vector<8x4xbf16>, vector<144x4xf32> -> vector<144x4xf32>
    %22 = vector.extract_strided_slice %17 {offsets = [1, 0], sizes = [144, 8], strides = [1, 1]} : vector<198x8xbf16> to vector<144x8xbf16>
    %c1 = arith.constant 1 : index
    %c0_15 = arith.constant 0 : index
    %c0_16 = arith.constant 0 : index
    %23 = vector.load %arg5[%c1, %c0_15, %c0_16] : memref<9x8x4xbf16, #tpu.memory_space<vmem>>, vector<1x8x4xbf16>
    %24 = vector.shape_cast %23 : vector<1x8x4xbf16> to vector<8x4xbf16>
    %cst_17 = arith.constant dense<0.000000e+00> : vector<144x4xf32>
    %25 = tpu.matmul %22, %24, %cst_17 {dimension_numbers = #tpu.dot_dimension_numbers<[1], [0], [0], [1], [0, 0, 1, 1], [], []>} : vector<144x8xbf16>, vector<8x4xbf16>, vector<144x4xf32> -> vector<144x4xf32>
    %26 = arith.addf %21, %25 : vector<144x4xf32>
    %27 = vector.extract_strided_slice %17 {offsets = [2, 0], sizes = [144, 8], strides = [1, 1]} : vector<198x8xbf16> to vector<144x8xbf16>
    %c2 = arith.constant 2 : index
    %c0_18 = arith.constant 0 : index
    %c0_19 = arith.constant 0 : index
    %28 = vector.load %arg5[%c2, %c0_18, %c0_19] : memref<9x8x4xbf16, #tpu.memory_space<vmem>>, vector<1x8x4xbf16>
    %29 = vector.shape_cast %28 : vector<1x8x4xbf16> to vector<8x4xbf16>
    %cst_20 = arith.constant dense<0.000000e+00> : vector<144x4xf32>
    %30 = tpu.matmul %27, %29, %cst_20 {dimension_numbers = #tpu.dot_dimension_numbers<[1], [0], [0], [1], [0, 0, 1, 1], [], []>} : vector<144x8xbf16>, vector<8x4xbf16>, vector<144x4xf32> -> vector<144x4xf32>
    %31 = arith.addf %26, %30 : vector<144x4xf32>
    %32 = vector.extract_strided_slice %17 {offsets = [18, 0], sizes = [144, 8], strides = [1, 1]} : vector<198x8xbf16> to vector<144x8xbf16>
    %c3 = arith.constant 3 : index
    %c0_21 = arith.constant 0 : index
    %c0_22 = arith.constant 0 : index
    %33 = vector.load %arg5[%c3, %c0_21, %c0_22] : memref<9x8x4xbf16, #tpu.memory_space<vmem>>, vector<1x8x4xbf16>
    %34 = vector.shape_cast %33 : vector<1x8x4xbf16> to vector<8x4xbf16>
    %cst_23 = arith.constant dense<0.000000e+00> : vector<144x4xf32>
    %35 = tpu.matmul %32, %34, %cst_23 {dimension_numbers = #tpu.dot_dimension_numbers<[1], [0], [0], [1], [0, 0, 1, 1], [], []>} : vector<144x8xbf16>, vector<8x4xbf16>, vector<144x4xf32> -> vector<144x4xf32>
    %36 = arith.addf %31, %35 : vector<144x4xf32>
    %37 = vector.extract_strided_slice %17 {offsets = [19, 0], sizes = [144, 8], strides = [1, 1]} : vector<198x8xbf16> to vector<144x8xbf16>
    %c4 = arith.constant 4 : index
    %c0_24 = arith.constant 0 : index
    %c0_25 = arith.constant 0 : index
    %38 = vector.load %arg5[%c4, %c0_24, %c0_25] : memref<9x8x4xbf16, #tpu.memory_space<vmem>>, vector<1x8x4xbf16>
    %39 = vector.shape_cast %38 : vector<1x8x4xbf16> to vector<8x4xbf16>
    %cst_26 = arith.constant dense<0.000000e+00> : vector<144x4xf32>
    %40 = tpu.matmul %37, %39, %cst_26 {dimension_numbers = #tpu.dot_dimension_numbers<[1], [0], [0], [1], [0, 0, 1, 1], [], []>} : vector<144x8xbf16>, vector<8x4xbf16>, vector<144x4xf32> -> vector<144x4xf32>
    %41 = arith.addf %36, %40 : vector<144x4xf32>
    %42 = vector.extract_strided_slice %17 {offsets = [20, 0], sizes = [144, 8], strides = [1, 1]} : vector<198x8xbf16> to vector<144x8xbf16>
    %c5 = arith.constant 5 : index
    %c0_27 = arith.constant 0 : index
    %c0_28 = arith.constant 0 : index
    %43 = vector.load %arg5[%c5, %c0_27, %c0_28] : memref<9x8x4xbf16, #tpu.memory_space<vmem>>, vector<1x8x4xbf16>
    %44 = vector.shape_cast %43 : vector<1x8x4xbf16> to vector<8x4xbf16>
    %cst_29 = arith.constant dense<0.000000e+00> : vector<144x4xf32>
    %45 = tpu.matmul %42, %44, %cst_29 {dimension_numbers = #tpu.dot_dimension_numbers<[1], [0], [0], [1], [0, 0, 1, 1], [], []>} : vector<144x8xbf16>, vector<8x4xbf16>, vector<144x4xf32> -> vector<144x4xf32>
    %46 = arith.addf %41, %45 : vector<144x4xf32>
    %47 = vector.extract_strided_slice %17 {offsets = [36, 0], sizes = [144, 8], strides = [1, 1]} : vector<198x8xbf16> to vector<144x8xbf16>
    %c6 = arith.constant 6 : index
    %c0_30 = arith.constant 0 : index
    %c0_31 = arith.constant 0 : index
    %48 = vector.load %arg5[%c6, %c0_30, %c0_31] : memref<9x8x4xbf16, #tpu.memory_space<vmem>>, vector<1x8x4xbf16>
    %49 = vector.shape_cast %48 : vector<1x8x4xbf16> to vector<8x4xbf16>
    %cst_32 = arith.constant dense<0.000000e+00> : vector<144x4xf32>
    %50 = tpu.matmul %47, %49, %cst_32 {dimension_numbers = #tpu.dot_dimension_numbers<[1], [0], [0], [1], [0, 0, 1, 1], [], []>} : vector<144x8xbf16>, vector<8x4xbf16>, vector<144x4xf32> -> vector<144x4xf32>
    %51 = arith.addf %46, %50 : vector<144x4xf32>
    %52 = vector.extract_strided_slice %17 {offsets = [37, 0], sizes = [144, 8], strides = [1, 1]} : vector<198x8xbf16> to vector<144x8xbf16>
    %c7 = arith.constant 7 : index
    %c0_33 = arith.constant 0 : index
    %c0_34 = arith.constant 0 : index
    %53 = vector.load %arg5[%c7, %c0_33, %c0_34] : memref<9x8x4xbf16, #tpu.memory_space<vmem>>, vector<1x8x4xbf16>
    %54 = vector.shape_cast %53 : vector<1x8x4xbf16> to vector<8x4xbf16>
    %cst_35 = arith.constant dense<0.000000e+00> : vector<144x4xf32>
    %55 = tpu.matmul %52, %54, %cst_35 {dimension_numbers = #tpu.dot_dimension_numbers<[1], [0], [0], [1], [0, 0, 1, 1], [], []>} : vector<144x8xbf16>, vector<8x4xbf16>, vector<144x4xf32> -> vector<144x4xf32>
    %56 = arith.addf %51, %55 : vector<144x4xf32>
    %57 = vector.extract_strided_slice %17 {offsets = [38, 0], sizes = [144, 8], strides = [1, 1]} : vector<198x8xbf16> to vector<144x8xbf16>
    %c8 = arith.constant 8 : index
    %c0_36 = arith.constant 0 : index
    %c0_37 = arith.constant 0 : index
    %58 = vector.load %arg5[%c8, %c0_36, %c0_37] : memref<9x8x4xbf16, #tpu.memory_space<vmem>>, vector<1x8x4xbf16>
    %59 = vector.shape_cast %58 : vector<1x8x4xbf16> to vector<8x4xbf16>
    %cst_38 = arith.constant dense<0.000000e+00> : vector<144x4xf32>
    %60 = tpu.matmul %57, %59, %cst_38 {dimension_numbers = #tpu.dot_dimension_numbers<[1], [0], [0], [1], [0, 0, 1, 1], [], []>} : vector<144x8xbf16>, vector<8x4xbf16>, vector<144x4xf32> -> vector<144x4xf32>
    %61 = arith.addf %56, %60 : vector<144x4xf32>
    %c0_39 = arith.constant 0 : index
    %c0_40 = arith.constant 0 : index
    %62 = vector.load %arg7[%c0_39, %c0_40] : memref<1x4xf32, #tpu.memory_space<vmem>>, vector<1x4xf32>
    %63 = vector.broadcast %62 : vector<1x4xf32> to vector<144x4xf32>
    %64 = arith.addf %61, %63 : vector<144x4xf32>
    %cst_41 = arith.constant 0.000000e+00 : f32
    %65 = vector.broadcast %cst_41 : f32 to vector<144x4xf32>
    %66 = arith.cmpf ogt, %64, %65 : vector<144x4xf32>
    %cst_42 = arith.constant 1.000000e-01 : f32
    %67 = vector.broadcast %cst_42 : f32 to vector<144x4xf32>
    %68 = arith.mulf %67, %64 : vector<144x4xf32>
    %69 = arith.select %66, %64, %68 : vector<144x4xi1>, vector<144x4xf32>
    %70 = vector.extract_strided_slice %1 {offsets = [19, 0], sizes = [144, 4], strides = [1, 1]} : vector<198x4xf32> to vector<144x4xf32>
    %71 = arith.addf %69, %70 : vector<144x4xf32>
    %c0_43 = arith.constant 0 : index
    %c0_44 = arith.constant 0 : index
    %c0_45 = arith.constant 0 : index
    %c0_46 = arith.constant 0 : index
    %72 = vector.load %arg8[%c0_43, %c0_44, %c0_45, %c0_46] : memref<1x1x144x4xf32, #tpu.memory_space<vmem>>, vector<1x1x144x4xf32>
    %73 = vector.shape_cast %72 : vector<1x1x144x4xf32> to vector<144x4xf32>
    %74 = vector.shape_cast %71 : vector<144x4xf32> to vector<1x1x144x4xf32>
    tpu.vector_store %arg8[%c0_43, %c0_44, %c0_45, %c0_46], %74 {strides = array<i32>} : memref<1x1x144x4xf32, #tpu.memory_space<vmem>>, vector<1x1x144x4xf32>,
    return
  }
  func.func @transform_0(%arg0: i32, %arg1: i32) -> (i32, i32, i32) {
    %c2_i32 = arith.constant 2 : i32
    %0 = arith.muli %arg0, %c2_i32 : i32
    %1 = arith.addi %0, %arg1 : i32
    %c0_i32 = arith.constant 0 : i32
    %c0_i32_0 = arith.constant 0 : i32
    %c0_i32_1 = arith.constant 0 : i32
    return %1, %c0_i32, %c0_i32_0 : i32, i32, i32
  }
  func.func @transform_1(%arg0: i32, %arg1: i32) -> (i32, i32, i32) {
    %c0_i32 = arith.constant 0 : i32
    %c0_i32_0 = arith.constant 0 : i32
    %c0_i32_1 = arith.constant 0 : i32
    return %arg1, %c0_i32, %c0_i32_0 : i32, i32, i32
  }
  func.func @transform_2(%arg0: i32, %arg1: i32) -> (i32, i32) {
    %c0_i32 = arith.constant 0 : i32
    %c0_i32_0 = arith.constant 0 : i32
    %c0_i32_1 = arith.constant 0 : i32
    return %c0_i32, %c0_i32_0 : i32, i32
  }
  func.func @transform_3(%arg0: i32, %arg1: i32) -> (i32, i32, i32) {
    %c0_i32 = arith.constant 0 : i32
    %c0_i32_0 = arith.constant 0 : i32
    %c0_i32_1 = arith.constant 0 : i32
    %c0_i32_2 = arith.constant 0 : i32
    return %c0_i32, %c0_i32_0, %c0_i32_1 : i32, i32, i32
  }
  func.func @transform_4(%arg0: i32, %arg1: i32) -> (i32, i32) {
    %c0_i32 = arith.constant 0 : i32
    %c0_i32_0 = arith.constant 0 : i32
    %c0_i32_1 = arith.constant 0 : i32
    return %c0_i32, %c0_i32_0 : i32, i32
  }
  func.func @transform_5(%arg0: i32, %arg1: i32) -> (i32, i32) {
    %c0_i32 = arith.constant 0 : i32
    %c0_i32_0 = arith.constant 0 : i32
    %c0_i32_1 = arith.constant 0 : i32
    return %c0_i32, %c0_i32_0 : i32, i32
  }
  func.func @transform_6(%arg0: i32, %arg1: i32) -> (i32, i32, i32, i32) {
    %c0_i32 = arith.constant 0 : i32
    %c0_i32_0 = arith.constant 0 : i32
    %c0_i32_1 = arith.constant 0 : i32
    return %arg0, %arg1, %c0_i32, %c0_i32_0 : i32, i32, i32, i32
  }
}

</mosaic_0001>

<bundles_post_ra>
// kernel: cbr_forward.1
= control target key start
LH: loop header
LB: loop body
LE: loop exit
PB: predicated region body
PF: predicated region fallthrough
CT: control target
= control target key end

     0   :  { %s2403_s21 = smov 0   ;;  %s2405_s22 = smov 0   ;;  %s3406_s0 = inlined_call_operand.vmem [shape: f32[4,198,4], index: 0, kind: input, shape index: {}]   ;;  %s3407_s1 = inlined_call_operand.vmem [shape: f32[2,198,1], index: 1, kind: input, shape index: {}]   ;;  %s3408_s2 = inlined_call_operand.vmem [shape: bf16[4,8], index: 2, kind: input, shape index: {}]   ;;  %s3409_s3 = inlined_call_operand.vmem [shape: bf16[9,8,4], index: 3, kind: input, shape index: {}]   ;;  %s3410_s4 = inlined_call_operand.vmem [shape: f32[1,8], index: 4, kind: input, shape index: {}]   ;;  %s3411_s5 = inlined_call_operand.vmem [shape: f32[1,4], index: 5, kind: input, shape index: {}]   ;;  %s3412_s6 = inlined_call_operand.vmem [shape: f32[2,2,144,4], index: 6, kind: output, shape index: {}]  }
   0x1   :  { %s2407_s23 = smov 0   ;;  %s2409_s24 = smov 0  }
   0x2   :  { %s2411_s25 = smov 0  }
   0x3 LB: > { %s25_s26 = sadd.s32 1, %s2357_s23  ;;  %s28_s27 = sadd.s32 1, %s2361_s24  ;;  %s2365_s25 = sphi %s2411_s25, %s16_s25   ;;  %s2361_s24 = sphi %s2409_s24, %s3488_s24   ;;  %s2357_s23 = sphi %s2407_s23, %s3487_s23   ;;  %s2353_s22 = sphi %s2405_s22, %s3486_s22   ;;  %s2349_s21 = sphi %s2403_s21, %s3485_s21  }
   0x4   : > { %p26_p0 = scmp.ge.s32.totalorder %s25_s26, 2  ;;  %p2166_p1 = scmp.ge.s32.totalorder %s2365_s25, 1 }
   0x5   : > { %p244_p2 = scmp.lt.s32.totalorder %s2365_s25, 5 }
   0x6   : > { %s3490_s26 = smov (%p26_p0, %s25_s26), 0  ;;  %s3492_s27 = smov (!%p26_p0, %s28_s27), %s2361_s24 }
   0x7   : > { %p245_p3 = pnand %p2166_p1, %p244_p2  ;;  %p30_p4 = scmp.ge.s32.totalorder %s3492_s27, 2 }
   0x9   : > { %s3494_s27 = smov (%p30_p4, %s3492_s27), 0  ;;  %248 = sbr.rel (%p245_p3) target bundleno = 813 (0x32d), region = 44 }
   0xe   : > { %v347_v0 = vld [vmem:[%s3408_s2] sm:$0x3]  ;;  %vm392_vm0 = vcmask 1041408   ;;  %s2167_s30 = sshll.u32 %s2353_s22, 1  ;;  %v2367_v2 = vmov 0   ;;  %p294_p5 = scmp.lt.s32.totalorder %s2349_s21, 1 }
   0xf   : > { %v394_v1 = vsel %vm392_vm0, %v347_v0, 0  ;;  %s286_s7 = sadd.s32 %s2349_s21, %s2167_s30  ;;  %2322 = vset.pattern.permute.xlu0 %v2367_v2  ;;  %2323 = vset.pattern.permute.xlu1 %v2367_v2  ;;  %vm352_vm1 = vcmask 31744   ;;  %vm1753_vm2 = vcmask 1044480   ;;  %vm876_vm3 = vcmask 1043456   ;;  %p299_p7 = scmp.lt.s32.totalorder %s2353_s22, 1 }
  0x10   : > { %403 = vmatpush.bf16.msra.mxu0 %v394_v1  ;;  %p287_p6 = scmp.lt.s32.totalorder %s286_s7, 3  ;;  %2324 = vset.pattern.permute.xlu2 %v2367_v2  ;;  %s3496_s21 = smov (!%p294_p5, %s2349_s21), 1  ;;  %vm848_vm6 = vcmask 64512   ;;  %vm1011_vm10 = vcmask 1046528   ;;  %vm771_vm11 = vsmask.f32 7424 }
  0x11   : > { %s2278_s8 = smul.u32 200, %s3496_s21  ;;  %vm1382_vm14 = vcmask 1045504   ;;  %s3500_s22 = smov (!%p299_p7, %s2353_s22), 1 }
  0x12   : > { %s3498_s7 = smov (!%p287_p6, %s286_s7), 3  ;;  %s2279_s19 = smul.u32 18, %s3496_s21 }
  0x13   : > { %s2277_s9 = smul.u32 200, %s3498_s7  ;;  %s2445_s12 = scalar_lea.vmem %s3407_s1, %s2278_s8 }
  0x14   : > { %v548_v3 = vld [vmem:[%s2445_s12 + $0x60] sm:$0xff]  ;;  %v550_v4 = vld [vmem:[%s2445_s12 + $0x70] sm:$0xff]  ;;  %v549_v18 = vld [vmem:[%s2445_s12 + $0x68] sm:$0xff]  ;;  %s2280_s20 = smul.u32 36, %s3500_s22 }
  0x15   : > { %s2450_s15 = scalar_lea.vmem %s3406_s0, %s2277_s9  ;;  %621 = vperm.xlu0 %2322, %v548_v3   ;;  %631 = vperm.xlu1 %2323, %v550_v4   ;;  %v536_v16 = vld [vmem:[%s2445_s12] sm:$0xff]  ;;  %v551_v19 = vld [vmem:[%s2445_s12 + $0x78] sm:$0xff]  ;;  %v537_v22 = vld [vmem:[%s2445_s12 + $0x8] sm:$0xff] }
  0x16   : > { %v309_v5 = vld [vmem:[%s2450_s15] sm:$0xff]  ;;  %v310_v6 = vld [vmem:[%s2450_s15 + $0x8] sm:$0xff]  ;;  %v311_v7 = vld [vmem:[%s2450_s15 + $0x10] sm:$0xff]  ;;  %561 = vperm.xlu2 %2324, %v536_v16   ;;  %s305_s30 = sadd.s32 %s2280_s20, %s2279_s19 }
  0x17   : > { %v334_v8 = vpack.c.bf16 %v310_v6, %v309_v5  ;;  %v312_v9 = vld [vmem:[%s2450_s15 + $0x18] sm:$0xff]  ;;  %v1971_v10 = vrot.slane %v311_v7, 3  ;;  %v313_v12 = vld [vmem:[%s2450_s15 + $0x20] sm:$0xff]  ;;  %v314_v13 = vld [vmem:[%s2450_s15 + $0x28] sm:$0xff]  ;;  %s2170_s21 = sshll.u32 %s305_s30, 3 }
  0x18   : > { %v1972_v11 = vrot.slane %v312_v9, 3  ;;  %v1974_v14 = vrot.slane %v313_v12, 3  ;;  %v1976_v15 = vrot.slane %v314_v13, 3  ;;  %v538_v23 = vld [vmem:[%s2445_s12 + $0x10] sm:$0xff]  ;;  %v539_v24 = vld [vmem:[%s2445_s12 + $0x18] sm:$0xff]  ;;  %v335_v25 = vpack.c.bf16 %v312_v9, %v311_v7  ;;  %v540_v30 = vld [vmem:[%s2445_s12 + $0x20] sm:$0xff]  ;;  %s3272_s8 = scalar_lea.vmem %s3412_s6, %s2170_s21 }
  0x19   : > { %2171 = vmatmul.msk.bf16.vlgmr.msra.gmra.mxu0 %vm352_vm1, %v334_v8  ;;  %v315_v26 = vld [vmem:[%s2450_s15 + $0x30] sm:$0xff]  ;;  %v316_v27 = vld [vmem:[%s2450_s15 + $0x38] sm:$0xff]  ;;  %v553_v33 = vld [vmem:[%s2445_s12 + $0x88] sm:$0xff]  ;;  %v336_v35 = vpack.c.bf16 %v314_v13, %v313_v12 }
  0x1a   : > { %v2463_v17 = vsel %vm1753_vm2, %v1971_v10, %v1972_v11  ;;  %v2468_v20 = vsel %vm1753_vm2, %v1972_v11, %v1974_v14  ;;  %v2471_v21 = vsel %vm1753_vm2, %v1974_v14, %v1976_v15  ;;  %v1978_v28 = vrot.slane %v315_v26, 3  ;;  %v542_v34 = vld [vmem:[%s2445_s12 + $0x30] sm:$0xff]  ;;  %v317_v36 = vld [vmem:[%s2450_s15 + $0x40] sm:$0xff]  ;;  %v318_v37 = vld [vmem:[%s2450_s15 + $0x48] sm:$0xff] }
  0x1b   : > { %3420 = vst [vmem:[#allocation2_spill] sm:$0xff] %v2468_v20  ;;  %v1980_v29 = vrot.slane %v316_v27, 3  ;;  %v1982_v38 = vrot.slane %v317_v36, 3  ;;  %v1984_v39 = vrot.slane %v318_v37, 3  ;;  %v554_v40 = vld [vmem:[%s2445_s12 + $0x90] sm:$0xff]  ;;  %v552_v41 = vld [vmem:[%s2445_s12 + $0x80] sm:$0xff]  ;;  %v337_v46 = vpack.c.bf16 %v316_v27, %v315_v26 }
  0x1c   : > { %3421 = vst [vmem:[#allocation3_spill] sm:$0xff] %v2471_v21  ;;  %v2481_v31 = vsel %vm1753_vm2, %v1976_v15, %v1978_v28  ;;  %v544_v44 = vld [vmem:[%s2445_s12 + $0x40] sm:$0xff]  ;;  %v541_v45 = vld [vmem:[%s2445_s12 + $0x28] sm:$0xff]  ;;  %v319_v47 = vld [vmem:[%s2450_s15 + $0x50] sm:$0xff]  ;;  %v338_v55 = vpack.c.bf16 %v318_v37, %v317_v36 }
  0x1d   : > { %626 = vperm.xlu0 %2322, %v549_v18   ;;  %636 = vperm.xlu1 %2323, %v551_v19   ;;  %3422 = vst [vmem:[#allocation4_spill] sm:$0xff] %v2481_v31  ;;  %v2484_v32 = vsel %vm1753_vm2, %v1978_v28, %v1980_v29  ;;  %v2494_v42 = vsel %vm1753_vm2, %v1980_v29, %v1982_v38  ;;  %v320_v48 = vld [vmem:[%s2450_s15 + $0x58] sm:$0xff]  ;;  %v1986_v49 = vrot.slane %v319_v47, 3  ;;  %v545_v51 = vld [vmem:[%s2445_s12 + $0x48] sm:$0xff]  ;;  %v321_v56 = vld [vmem:[%s2450_s15 + $0x60] sm:$0xff] }
  0x1e   : > { %566 = vperm.xlu2 %2324, %v537_v22   ;;  %3423 = vst [vmem:[#allocation5_spill] sm:$0xff] %v2484_v32  ;;  %v2497_v43 = vsel %vm1753_vm2, %v1982_v38, %v1984_v39  ;;  %v1988_v50 = vrot.slane %v320_v48, 3  ;;  %v543_v52 = vld [vmem:[%s2445_s12 + $0x38] sm:$0xff]  ;;  %v322_v57 = vld [vmem:[%s2450_s15 + $0x68] sm:$0xff]  ;;  %v1990_v58 = vrot.slane %v321_v56, 3  ;;  %v339_v63 = vpack.c.bf16 %v320_v48, %v319_v47  ;;  %v323_v0 = vld [vmem:[%s2450_s15 + $0x70] sm:$0xff] }
  0x1f   : > { %3424 = vst [vmem:[#allocation6_spill] sm:$0xff] %v2494_v42  ;;  %v2507_v53 = vsel %vm1753_vm2, %v1984_v39, %v1986_v49  ;;  %v1992_v59 = vrot.slane %v322_v57, 3  ;;  %v547_v60 = vld [vmem:[%s2445_s12 + $0x58] sm:$0xff]  ;;  %v1994_v2 = vrot.slane %v323_v0, 3  ;;  %v546_v5 = vld [vmem:[%s2445_s12 + $0x50] sm:$0xff]  ;;  %v340_v8 = vpack.c.bf16 %v322_v57, %v321_v56  ;;  %v557_v9 = vld [vmem:[%s2445_s12 + $0xa8] sm:$0xff] }
  0x20   : > { %3425 = vst [vmem:[#allocation7_spill] sm:$0xff] %v2497_v43  ;;  %v2510_v54 = vsel %vm1753_vm2, %v1986_v49, %v1988_v50  ;;  %v2517_v61 = vsel %vm1753_vm2, %v1988_v50, %v1990_v58  ;;  %v324_v1 = vld [vmem:[%s2450_s15 + $0x78] sm:$0xff]  ;;  %v558_v10 = vld [vmem:[%s2445_s12 + $0xb0] sm:$0xff]  ;;  %v325_v11 = vld [vmem:[%s2450_s15 + $0x80] sm:$0xff] }
  0x21   : > { %3426 = vst [vmem:[#allocation8_spill] sm:$0xff] %v2507_v53  ;;  %v2520_v62 = vsel %vm1753_vm2, %v1990_v58, %v1992_v59  ;;  %v1996_v3 = vrot.slane %v324_v1, 3  ;;  %v555_v4 = vld [vmem:[%s2445_s12 + $0x98] sm:$0xff]  ;;  %v2528_v6 = vsel %vm1753_vm2, %v1992_v59, %v1994_v2  ;;  %v326_v12 = vld [vmem:[%s2450_s15 + $0x88] sm:$0xff]  ;;  %v1998_v13 = vrot.slane %v325_v11, 3  ;;  %v556_v36 = vld [vmem:[%s2445_s12 + $0xa0] sm:$0xff] }
  0x22   : > { %3427 = vst [vmem:[#allocation9_spill] sm:$0xff] %v2510_v54  ;;  %v2000_v14 = vrot.slane %v326_v12, 3  ;;  %v341_v18 = vpack.c.bf16 %v324_v1, %v323_v0  ;;  %v720_v19 = vld [vmem:[%s3409_s3] sm:$0xf] }
  0x23   : > { %3428 = vst [vmem:[#allocation10_spill] sm:$0xff] %v2517_v61  ;;  %v2531_v7 = vsel %vm1753_vm2, %v1994_v2, %v1996_v3  ;;  %v2539_v15 = vsel %vm1753_vm2, %v1996_v3, %v1998_v13  ;;  %v953_v22 = vsel %vm876_vm3, %v720_v19, 0  ;;  %v2560_v29 = vld [vmem:[%s3410_s4] ss:$0 sm:$0xff] }
  0x24   : > { %3429 = vst [vmem:[#allocation11_spill] sm:$0xff] %v2520_v62  ;;  %v2542_v16 = vsel %vm1753_vm2, %v1998_v13, %v2000_v14  ;;  %962 = vmatpush.bf16.msra.mxu2 %v953_v22  ;;  %v329_v39 = vld [vmem:[%s2450_s15 + $0xa0] sm:$0xff] }
  0x25   : > { %571 = vperm.xlu0 %2322, %v538_v23   ;;  %576 = vperm.xlu1 %2323, %v539_v24   ;;  %3430 = vst [vmem:[#allocation12_spill] sm:$0xff] %v2528_v6  ;;  %v327_v23 = vld [vmem:[%s2450_s15 + $0x90] sm:$0xff]  ;;  %v328_v24 = vld [vmem:[%s2450_s15 + $0x98] sm:$0xff] }
  0x26   : > { %641 = vperm.xlu2 %2324, %v552_v41   ;;  %3431 = vst [vmem:[#allocation13_spill] sm:$0xff] %v2531_v7  ;;  %v2004_v26 = vrot.slane %v328_v24, 3  ;;  %v343_v59 = vpack.c.bf16 %v328_v24, %v327_v23 }
  0x27   : > { %3432 = vst [vmem:[#allocation14_spill] sm:$0xff] %v2539_v15 }
  0x28   : > { %3433 = vst [vmem:[#allocation15_spill] sm:$0xff] %v2542_v16 }
  0x29   : > { %2172 = vmatmul.msk.bf16.gmra.mxu0 %vm352_vm1, %v335_v25  ;;  %v2002_v25 = vrot.slane %v327_v23, 3 }
  0x2b   : > { %v2552_v27 = vsel %vm1753_vm2, %v2000_v14, %v2002_v25  ;;  %v2555_v28 = vsel %vm1753_vm2, %v2002_v25, %v2004_v26 }
  0x2c   : > { %3434 = vst [vmem:[#allocation16_spill] sm:$0xff] %v2552_v27 }
  0x2d   : > { %581 = vperm.xlu1 %2323, %v540_v30   ;;  %646 = vperm.xlu0 %2322, %v553_v33   ;;  %3435 = vst [vmem:[#allocation17_spill] sm:$0xff] %v2555_v28  ;;  %v342_v30 = vpack.c.bf16 %v326_v12, %v325_v11 }
  0x2e   : > { %586 = vperm.xlu2 %2324, %v541_v45  }
  0x35   : > { %591 = vperm.xlu1 %2323, %v542_v34   ;;  %651 = vperm.xlu0 %2322, %v554_v40   ;;  %v2006_v40 = vrot.slane %v329_v39, 3 }
  0x36   : > { %596 = vperm.xlu2 %2324, %v543_v52  }
  0x37   : > { %v2569_v41 = vsel %vm1753_vm2, %v2004_v26, %v2006_v40 }
  0x38   : > { %3436 = vst [vmem:[#allocation18_spill] sm:$0xff] %v2569_v41 }
  0x39   : > { %2173 = vmatmul.msk.bf16.gmra.mxu0 %vm352_vm1, %v336_v35 }
  0x3d   : > { %601 = vperm.xlu0 %2322, %v544_v44   ;;  %606 = vperm.xlu1 %2323, %v545_v51   ;;  %v2184_v44 = vld [vmem:[%s3409_s3 + $0x4] sm:$0xf] }
  0x3e   : > { %611 = vperm.xlu2 %2324, %v546_v5   ;;  %v878_v47 = vsel %vm876_vm3, %v2184_v44, 0 }
  0x3f   : > { %887 = vmatpush.bf16.msra.mxu1 %v878_v47  ;;  %2275 = vmatpush.bf16.msra.mxu3 %v878_v47 }
  0x43   : > { %2276 = vmatpush.bf16.msrb.mxu3 %v953_v22 }
  0x45   : > { %616 = vperm.xlu0 %2322, %v547_v60   ;;  %656 = vperm.xlu1 %2323, %v555_v4  }
  0x46   : > { %661 = vperm.xlu2 %2324, %v556_v36  }
  0x49   : > { %2174 = vmatmul.msk.bf16.gmra.mxu0 %vm352_vm1, %v337_v46 }
  0x4d   : > { %666 = vperm.xlu0 %2322, %v557_v9   ;;  %671 = vperm.xlu1 %2323, %v558_v10  }
  0x59   : > { %2175 = vmatmul.msk.bf16.gmra.mxu0 %vm352_vm1, %v338_v55 }
  0x69   : > { %2176 = vmatmul.msk.bf16.gmra.mxu0 %vm352_vm1, %v339_v63 }
  0x70   : > { %v562_v35 = vpop.permute.xlu2 %561 }
  0x78   : > { %v567_v51 = vpop.permute.xlu2 %566 }
  0x79   : > { %2177 = vmatmul.msk.bf16.gmra.mxu0 %vm352_vm1, %v340_v8 }
  0x87   : > { %v2565_v38 = vpop.permute.xlu0 %621  ;;  %v2574_v46 = vpop.permute.xlu1 %631 }
  0x89   : > { %2178 = vmatmul.msk.bf16.gmra.mxu0 %vm352_vm1, %v341_v18  ;;  %v330_v18 = vld [vmem:[%s2450_s15 + $0xa8] sm:$0xff] }
  0x8a   : > { %v344_v24 = vpack.c.bf16 %v330_v18, %v329_v39 }
  0x8f   : > { %v2578_v55 = vpop.permute.xlu0 %626  ;;  %v2581_v1 = vpop.permute.xlu1 %636 }
  0x96   : > { %v405_v33 = vpop.f32.mrf.mxu0 }
  0x97   : > { %v406_v34 = vadd.f32 %v2560_v29, %v405_v33  ;;  %v572_v8 = vpop.permute.xlu0 %571  ;;  %v577_v13 = vpop.permute.xlu1 %576 }
  0x99   : > { %v490_v37 = vmul.f32 0.1, %v406_v34  ;;  %2179 = vmatmul.msk.bf16.gmra.mxu0 %vm352_vm1, %v342_v30  ;;  %vm467_vm4 = vcmp.gt.f32.partialorder %v406_v34, 0.0 }
  0x9b   : > { %v513_v45 = vsel %vm467_vm4, %v406_v34, %v490_v37  ;;  %v2588_v34 = vpop.permute.xlu2 %641 }
  0x9c   : > { %v674_v50 = vmul.f32 %v562_v35, %v513_v45 }
  0x9e   : > { %v407_v48 = vpop.f32.mrf.mxu0  ;;  %v697_v57 = vpack.c.bf16 %v674_v50, %v674_v50 }
  0x9f   : > { %v408_v49 = vadd.f32 %v2560_v29, %v407_v48  ;;  %v582_v48 = vpop.permute.xlu1 %581 }
  0xa0   : > { %v742_v2 = vunpack.c.l.b16 %v697_v57 }
  0xa1   : > { %vm468_vm5 = vcmp.gt.f32.partialorder %v408_v49, 0.0  ;;  %v491_v52 = vmul.f32 0.1, %v408_v49 }
  0xa3   : > { %v514_v56 = vsel %vm468_vm5, %v408_v49, %v491_v52  ;;  %vm1599_vm5 = vsmask.f32 5376 }
  0xa4   : > { %v675_v58 = vmul.f32 %v567_v51, %v514_v56 }
  0xa6   : > { %v698_v60 = vpack.c.bf16 %v675_v58, %v675_v58  ;;  %v410_v63 = vpop.f32.mrf.mxu0 }
  0xa7   : > { %v411_v0 = vadd.f32 %v2560_v29, %v410_v63  ;;  %v587_v63 = vpop.permute.xlu2 %586 }
  0xa8   : > { %v743_v3 = vunpack.c.l.b16 %v698_v60 }
  0xa9   : > { %v492_v4 = vmul.f32 0.1, %v411_v0  ;;  %2180 = vmatmul.msk.bf16.gmra.mxu0 %vm352_vm1, %v343_v59  ;;  %vm469_vm7 = vcmp.gt.f32.partialorder %v411_v0, 0.0 }
  0xaa   : > { %v761_v5 = vpack.c.b16 %v743_v3, %v742_v2  ;;  %v331_v2 = vld [vmem:[%s2450_s15 + $0xb0] sm:$0xff]  ;;  %v332_v3 = vld [vmem:[%s2450_s15 + $0xb8] sm:$0xff] }
  0xab   : > { %v515_v9 = vsel %vm469_vm7, %v411_v0, %v492_v4 }
  0xac   : > { %2194 = vmatmul.msk.bf16.vlgmr.msra.gmra.mxu2 %vm848_vm6, %v761_v5  ;;  %v676_v12 = vmul.f32 %v572_v8, %v515_v9  ;;  %v775_v30 = vshll.u32 %v761_v5, 16  ;;  %v773_v39 = vshrl.u32 %v761_v5, 16  ;;  %v1012_v50 = vrot.slane %v761_v5, 1  ;;  %v2243_v9 = vld [vmem:[%s3409_s3 + $0x18] sm:$0xf] }
  0xae   : > { %v412_v10 = vpop.f32.mrf.mxu0  ;;  %v699_v22 = vpack.c.bf16 %v676_v12, %v676_v12  ;;  %v777_v44 = vrot.slane %v775_v30, 1 }
  0xaf   : > { %v413_v11 = vadd.f32 %v2560_v29, %v412_v10  ;;  %v345_v10 = vpack.c.bf16 %v332_v3, %v331_v2 }
  0xb0   : > { %v744_v35 = vunpack.c.l.b16 %v699_v22  ;;  %v778_v52 = vor.u32 %v777_v44, %v773_v39 }
  0xb1   : > { %vm470_vm8 = vcmp.gt.f32.partialorder %v413_v11, 0.0  ;;  %v493_v14 = vmul.f32 0.1, %v413_v11 }
  0xb3   : > { %v516_v19 = vsel %vm470_vm8, %v413_v11, %v493_v14  ;;  %v1523_v11 = vsel %vm876_vm3, %v2243_v9, 0 }
  0xb4   : > { %v677_v23 = vmul.f32 %v577_v13, %v516_v19  ;;  %1532 = vmatpush.bf16.msrb.mxu0 %v1523_v11 }
  0xb6   : > { %v700_v25 = vpack.c.bf16 %v677_v23, %v677_v23  ;;  %v415_v26 = vpop.f32.mrf.mxu0  ;;  %v2613_v23 = vpop.permute.xlu0 %646 }
  0xb7   : > { %v416_v33 = vadd.f32 %v2560_v29, %v415_v26 }
  0xb8   : > { %v745_v36 = vunpack.c.l.b16 %v700_v25 }
  0xb9   : > { %v494_v37 = vmul.f32 0.1, %v416_v33  ;;  %2181 = vmatmul.msk.bf16.gmra.mxu0 %vm352_vm1, %v344_v24  ;;  %vm471_vm9 = vcmp.gt.f32.partialorder %v416_v33, 0.0 }
  0xba   : > { %v2591_v40 = vpack.c.b16 %v745_v36, %v744_v35 }
  0xbb   : > { %v517_v49 = vsel %vm471_vm9, %v416_v33, %v494_v37  ;;  %v592_v33 = vpop.permute.xlu1 %591 }
  0xbc   : > { %2195 = vmatmul.msk.bf16.gmra.mxu2 %vm848_vm6, %v2591_v40  ;;  %v3413_v45 = vshll.u32 %v2591_v40, 16  ;;  %v1013_v47 = vrot.slane %v2591_v40, 1  ;;  %v678_v59 = vmul.f32 %v582_v48, %v517_v49  ;;  %v3414_v25 = vshrl.u32 %v2591_v40, 16 }
  0xbd   : > { %v1383_v49 = vrot.slane %v2591_v40, 2 }
  0xbe   : > { %v417_v51 = vpop.f32.mrf.mxu0  ;;  %v782_v56 = vrot.slane %v3413_v45, 1  ;;  %v2601_v58 = vsel %vm1011_vm10, %v1012_v50, %v1013_v47  ;;  %v701_v5 = vpack.c.bf16 %v678_v59, %v678_v59  ;;  %v2646_v3 = vpop.permute.xlu0 %651 }
  0xbf   : > { %v418_v57 = vadd.f32 %v2560_v29, %v417_v51 }
  0xc0   : > { %v783_v60 = vsel %vm771_vm11, %v778_v52, %v782_v56  ;;  %v746_v18 = vunpack.c.l.b16 %v701_v5  ;;  %v786_v39 = vor.u32 %v3414_v25, %v782_v56  ;;  %v597_v56 = vpop.permute.xlu2 %596 }
  0xc1   : > { %2185 = vmatmul.msk.bf16.vlgmr.msra.gmra.mxu1 %vm848_vm6, %v783_v60  ;;  %vm472_vm12 = vcmp.gt.f32.partialorder %v418_v57, 0.0  ;;  %v495_v0 = vmul.f32 0.1, %v418_v57 }
  0xc3   : > { %v518_v4 = vsel %vm472_vm12, %v418_v57, %v495_v0 }
  0xc4   : > { %v679_v8 = vmul.f32 %v587_v63, %v518_v4 }
  0xc6   : > { %v702_v12 = vpack.c.bf16 %v679_v8, %v679_v8  ;;  %v420_v13 = vpop.f32.mrf.mxu0 }
  0xc7   : > { %v421_v14 = vadd.f32 %v2560_v29, %v420_v13 }
  0xc8   : > { %v747_v19 = vunpack.c.l.b16 %v702_v12 }
  0xc9   : > { %v496_v22 = vmul.f32 0.1, %v421_v14  ;;  %2182 = vmatmul.msk.bf16.gmra.mxu0 %vm352_vm1, %v345_v10  ;;  %vm473_vm13 = vcmp.gt.f32.partialorder %v421_v14, 0.0 }
  0xca   : > { %v2615_v24 = vpack.c.b16 %v747_v19, %v746_v18 }
  0xcb   : > { %v519_v35 = vsel %vm473_vm13, %v421_v14, %v496_v22  ;;  %vm1228_vm13 = vsmask.f32 6400 }
  0xcc   : > { %2196 = vmatmul.msk.bf16.gmra.mxu2 %vm848_vm6, %v2615_v24  ;;  %v2621_v26 = vshll.u32 %v2615_v24, 16  ;;  %v2624_v30 = vshrl.u32 %v2615_v24, 16  ;;  %v1384_v36 = vrot.slane %v2615_v24, 2  ;;  %v1015_v37 = vrot.slane %v2615_v24, 1 }
  0xcd   : > { %v680_v59 = vmul.f32 %v592_v33, %v519_v35  ;;  %v602_v35 = vpop.permute.xlu0 %601 }
  0xce   : > { %v422_v44 = vpop.f32.mrf.mxu0  ;;  %v790_v48 = vrot.slane %v2621_v26, 1  ;;  %v2634_v51 = vsel %vm1011_vm10, %v1013_v47, %v1015_v37  ;;  %v1600_v52 = vrot.slane %v2624_v30, 2  ;;  %v1601_v57 = vrot.slane %v2621_v26, 3  ;;  %v333_v47 = vld [vmem:[%s2450_s15 + $0xc0] sm:$0x3f] }
  0xcf   : > { %v423_v50 = vadd.f32 %v2560_v29, %v422_v44  ;;  %v2643_v2 = vsel %vm1382_vm14, %v1383_v49, %v1384_v36  ;;  %v703_v5 = vpack.c.bf16 %v680_v59, %v680_v59  ;;  %v346_v9 = vpack.c.bf16 %v333_v47, %v333_v47 }
  0xd0   : > { %v791_v60 = vsel %vm771_vm11, %v786_v39, %v790_v48  ;;  %v1602_v0 = vor.u32 %v1601_v57, %v1600_v52  ;;  %v1754_v49 = vrot.slane %v2615_v24, 3  ;;  %v794_v57 = vor.u32 %v2624_v30, %v790_v48 }
  0xd1   : > { %2186 = vmatmul.msk.bf16.gmra.mxu1 %vm848_vm6, %v791_v60  ;;  %vm474_vm15 = vcmp.gt.f32.partialorder %v423_v50, 0.0  ;;  %v497_v63 = vmul.f32 0.1, %v423_v50  ;;  %v748_v13 = vunpack.c.l.b16 %v703_v5 }
  0xd3   : > { %v520_v4 = vsel %vm474_vm15, %v423_v50, %v497_v63 }
  0xd4   : > { %v681_v8 = vmul.f32 %v597_v56, %v520_v4 }
  0xd6   : > { %v704_v10 = vpack.c.bf16 %v681_v8, %v681_v8  ;;  %v425_v11 = vpop.f32.mrf.mxu0  ;;  %v607_v8 = vpop.permute.xlu1 %606 }
  0xd7   : > { %v426_v12 = vadd.f32 %v2560_v29, %v425_v11 }
  0xd8   : > { %v749_v14 = vunpack.c.l.b16 %v704_v10 }
  0xd9   : > { %v498_v18 = vmul.f32 0.1, %v426_v12  ;;  %2183 = vmatmul.msk.bf16.gmra.mxu0 %vm352_vm1, %v346_v9  ;;  %vm475_vm0 = vcmp.gt.f32.partialorder %v426_v12, 0.0 }
  0xda   : > { %v2650_v19 = vpack.c.b16 %v749_v14, %v748_v13 }
  0xdb   : > { %v521_v44 = vsel %vm475_vm0, %v426_v12, %v498_v18 }
  0xdc   : > { %2197 = vmatmul.msk.bf16.gmra.mxu2 %vm848_vm6, %v2650_v19  ;;  %v2655_v22 = vshll.u32 %v2650_v19, 16  ;;  %v2658_v33 = vshrl.u32 %v2650_v19, 16  ;;  %v1017_v39 = vrot.slane %v2650_v19, 1  ;;  %v1755_v50 = vrot.slane %v2650_v19, 3 }
  0xdd   : > { %v682_v47 = vmul.f32 %v602_v35, %v521_v44  ;;  %v1386_v13 = vrot.slane %v2650_v19, 2 }
  0xde   : > { %v427_v52 = vpop.f32.mrf.mxu0  ;;  %v798_v59 = vrot.slane %v2655_v22, 1  ;;  %v2667_v56 = vsel %vm1011_vm10, %v1015_v37, %v1017_v39  ;;  %v2670_v63 = vsel %vm1753_vm2, %v1754_v49, %v1755_v50  ;;  %v1603_v5 = vrot.slane %v2658_v33, 2  ;;  %v2223_v49 = vld [vmem:[%s3409_s3 + $0x10] sm:$0xf] }
  0xdf   : > { %v428_v60 = vadd.f32 %v2560_v29, %v427_v52  ;;  %v1604_v9 = vrot.slane %v2655_v22, 3  ;;  %v705_v37 = vpack.c.bf16 %v682_v47, %v682_v47  ;;  %v1306_v19 = vsel %vm876_vm3, %v2223_v49, 0 }
  0xe0   : > { %v799_v4 = vsel %vm771_vm11, %v794_v57, %v798_v59  ;;  %1315 = vmatpush.bf16.msrb.mxu2 %v1306_v19 }
  0xe1   : > { %2187 = vmatmul.msk.bf16.gmra.mxu1 %vm848_vm6, %v799_v4  ;;  %vm476_vm4 = vcmp.gt.f32.partialorder %v428_v60, 0.0  ;;  %v499_v48 = vmul.f32 0.1, %v428_v60  ;;  %v1605_v11 = vor.u32 %v1604_v9, %v1603_v5  ;;  %v750_v52 = vunpack.c.l.b16 %v705_v37 }
  0xe3   : > { %v522_v10 = vsel %vm476_vm4, %v428_v60, %v499_v48  ;;  %v2678_v14 = vsel %vm1599_vm5, %v1602_v0, %v1605_v11  ;;  %v2687_v60 = vsel %vm1382_vm14, %v1384_v36, %v1386_v13  ;;  %v612_v36 = vpop.permute.xlu2 %611 }
  0xe4   : > { %v683_v12 = vmul.f32 %v607_v8, %v522_v10  ;;  %v802_v10 = vor.u32 %v2658_v33, %v798_v59 }
  0xe6   : > { %v706_v18 = vpack.c.bf16 %v683_v12, %v683_v12  ;;  %v430_v35 = vpop.f32.mrf.mxu0 }
  0xe7   : > { %v431_v44 = vadd.f32 %v2560_v29, %v430_v35 }
  0xe8   : > { %v751_v57 = vunpack.c.l.b16 %v706_v18 }
  0xe9   : > { %v500_v47 = vmul.f32 0.1, %v431_v44  ;;  %2244 = vmatmul.msk.bf16.vlgmr.msrb.gmra.mxu0 %vm848_vm6, %v2687_v60  ;;  %vm477_vm7 = vcmp.gt.f32.partialorder %v431_v44, 0.0 }
  0xea   : > { %v2692_v0 = vpack.c.b16 %v751_v57, %v750_v52  ;;  %v617_v57 = vpop.permute.xlu0 %616 }
  0xeb   : > { %v523_v5 = vsel %vm477_vm7, %v431_v44, %v500_v47 }
  0xec   : > { %2198 = vmatmul.msk.bf16.gmra.mxu2 %vm848_vm6, %v2692_v0  ;;  %v2697_v4 = vshll.u32 %v2692_v0, 16  ;;  %v2700_v24 = vshrl.u32 %v2692_v0, 16  ;;  %v1019_v8 = vrot.slane %v2692_v0, 1  ;;  %v1757_v48 = vrot.slane %v2692_v0, 3 }
  0xed   : > { %v684_v49 = vmul.f32 %v612_v36, %v523_v5  ;;  %v1388_v25 = vrot.slane %v2692_v0, 2 }
  0xee   : > { %v432_v9 = vpop.f32.mrf.mxu0  ;;  %v806_v37 = vrot.slane %v2697_v4, 1  ;;  %v2708_v18 = vsel %vm1011_vm10, %v1017_v39, %v1019_v8  ;;  %v2711_v35 = vsel %vm1753_vm2, %v1755_v50, %v1757_v48  ;;  %v1607_v52 = vrot.slane %v2700_v24, 2 }
  0xef   : > { %v433_v12 = vadd.f32 %v2560_v29, %v432_v9  ;;  %v1608_v19 = vrot.slane %v2697_v4, 3  ;;  %v707_v45 = vpack.c.bf16 %v684_v49, %v684_v49  ;;  %v2723_v28 = vsel %vm1382_vm14, %v1386_v13, %v1388_v25  ;;  %v2213_v13 = vld [vmem:[%s3409_s3 + $0xc] sm:$0xf] }
  0xf0   : > { %v807_v44 = vsel %vm771_vm11, %v802_v10, %v806_v37 }
  0xf1   : > { %2188 = vmatmul.msk.bf16.gmra.mxu1 %vm848_vm6, %v807_v44  ;;  %vm478_vm8 = vcmp.gt.f32.partialorder %v433_v12, 0.0  ;;  %v501_v59 = vmul.f32 0.1, %v433_v12  ;;  %v1609_v9 = vor.u32 %v1608_v19, %v1607_v52  ;;  %v752_v41 = vunpack.c.l.b16 %v707_v45 }
  0xf2   : > { %v1152_v19 = vsel %vm876_vm3, %v2213_v13, 0 }
  0xf3   : > { %v524_v47 = vsel %vm478_vm8, %v433_v12, %v501_v59  ;;  %v2719_v50 = vsel %vm1599_vm5, %v1605_v11, %v1609_v9  ;;  %1161 = vmatpush.bf16.msrb.mxu1 %v1152_v19  ;;  %v3437_v19 = vshrl.u32 %v2591_v40, 16 }
  0xf4   : > { %v685_v39 = vmul.f32 %v617_v57, %v524_v47  ;;  %v810_v57 = vor.u32 %v2700_v24, %v806_v37 }
  0xf6   : > { %v708_v36 = vpack.c.bf16 %v685_v39, %v685_v39  ;;  %v435_v5 = vpop.f32.mrf.mxu0 }
  0xf7   : > { %v436_v10 = vadd.f32 %v2560_v29, %v435_v5 }
  0xf8   : > { %v753_v44 = vunpack.c.l.b16 %v708_v36 }
  0xf9   : > { %v502_v27 = vmul.f32 0.1, %v436_v10  ;;  %2245 = vmatmul.msk.bf16.gmra.mxu0 %vm848_vm6, %v2723_v28  ;;  %vm479_vm9 = vcmp.gt.f32.partialorder %v436_v10, 0.0 }
  0xfa   : > { %v2727_v12 = vpack.c.b16 %v753_v44, %v752_v41 }
  0xfb   : > { %v525_v0 = vsel %vm479_vm9, %v436_v10, %v502_v27 }
  0xfc   : > { %2199 = vmatmul.msk.bf16.gmra.mxu2 %vm848_vm6, %v2727_v12  ;;  %v2732_v11 = vshll.u32 %v2727_v12, 16  ;;  %v2735_v45 = vshrl.u32 %v2727_v12, 16  ;;  %v3416_v49 = vrot.slane %v2727_v12, 1  ;;  %v3415_v41 = vrot.slane %v2727_v12, 3 }
  0xfd   : > { %v686_v39 = vmul.f32 %v2565_v38, %v525_v0  ;;  %v1233_v38 = vrot.slane %v2621_v26, 2 }
  0xfe   : > { %v437_v52 = vpop.f32.mrf.mxu0  ;;  %v814_v59 = vrot.slane %v2732_v11, 1  ;;  %v2749_v47 = vsel %vm1011_vm10, %v1019_v8, %v3416_v49  ;;  %v2756_v37 = vsel %vm1753_vm2, %v1757_v48, %v3415_v41  ;;  %v1611_v10 = vrot.slane %v2735_v45, 2 }
  0xff   : > { %v438_v27 = vadd.f32 %v2560_v29, %v437_v52  ;;  %v1612_v44 = vrot.slane %v2732_v11, 3  ;;  %v1232_v8 = vrot.slane %v2624_v30, 1  ;;  %v709_v0 = vpack.c.bf16 %v686_v39, %v686_v39 }
 0x100   : > { %v815_v36 = vsel %vm771_vm11, %v810_v57, %v814_v59  ;;  %v1390_v57 = vrot.slane %v2727_v12, 2  ;;  %v1229_v41 = vrot.slane %v3437_v19, 1 }
 0x101   : > { %vm480_vm12 = vcmp.gt.f32.partialorder %v438_v27, 0.0  ;;  %v503_v5 = vmul.f32 0.1, %v438_v27  ;;  %2189 = vmatmul.msk.bf16.gmra.mxu1 %vm848_vm6, %v815_v36  ;;  %v1613_v48 = vor.u32 %v1612_v44, %v1611_v10  ;;  %v3438_v36 = vshll.u32 %v2591_v40, 16 }
 0x102   : > { %v1234_v26 = vor.u32 %v1233_v38, %v1232_v8  ;;  %v754_v39 = vunpack.c.l.b16 %v709_v0  ;;  %v818_v8 = vor.u32 %v2735_v45, %v814_v59  ;;  %v1237_v59 = vrot.slane %v2655_v22, 2 }
 0x103   : > { %v526_v13 = vsel %vm480_vm12, %v438_v27, %v503_v5  ;;  %v1230_v49 = vrot.slane %v3438_v36, 2  ;;  %v2770_v27 = vsel %vm1599_vm5, %v1609_v9, %v1613_v48 }
 0x104   : > { %v687_v52 = vmul.f32 %v2578_v55, %v526_v13  ;;  %v2774_v55 = vsel %vm1382_vm14, %v1388_v25, %v1390_v57 }
 0x105   : > { %v1231_v40 = vor.u32 %v1230_v49, %v1229_v41 }
 0x106   : > { %v710_v16 = vpack.c.bf16 %v687_v52, %v687_v52  ;;  %v440_v15 = vpop.f32.mrf.mxu0 }
 0x107   : > { %v441_v30 = vadd.f32 %v2560_v29, %v440_v15  ;;  %v1235_v9 = vsel %vm1228_vm13, %v1231_v40, %v1234_v26 }
 0x108   : > { %v755_v5 = vunpack.c.l.b16 %v710_v16 }
 0x109   : > { %v504_v10 = vmul.f32 0.1, %v441_v30  ;;  %2246 = vmatmul.msk.bf16.gmra.mxu0 %vm848_vm6, %v2774_v55  ;;  %vm481_vm15 = vcmp.gt.f32.partialorder %v441_v30, 0.0 }
 0x10a   : > { %v2778_v44 = vpack.c.b16 %v755_v5, %v754_v39  ;;  %v1236_v39 = vrot.slane %v2658_v33, 1 }
 0x10b   : > { %v527_v25 = vsel %vm481_vm15, %v441_v30, %v504_v10 }
 0x10c   : > { %2224 = vmatmul.msk.bf16.vlgmr.msrb.gmra.mxu2 %vm848_vm6, %v1235_v9  ;;  %v2783_v15 = vshll.u32 %v2778_v44, 16  ;;  %v2786_v16 = vshrl.u32 %v2778_v44, 16  ;;  %v688_v41 = vmul.f32 %v2574_v46, %v527_v25  ;;  %v1392_v46 = vrot.slane %v2778_v44, 2 }
 0x10e   : > { %v442_v13 = vpop.f32.mrf.mxu0  ;;  %v822_v38 = vrot.slane %v2783_v15, 1  ;;  %v1615_v52 = vrot.slane %v2786_v16, 2  ;;  %v1616_v36 = vrot.slane %v2783_v15, 3  ;;  %v711_v10 = vpack.c.bf16 %v688_v41, %v688_v41 }
 0x10f   : > { %v443_v49 = vadd.f32 %v2560_v29, %v442_v13  ;;  %v2805_v33 = vsel %vm1382_vm14, %v1390_v57, %v1392_v46 }
 0x110   : > { %v823_v0 = vsel %vm771_vm11, %v818_v8, %v822_v38  ;;  %v1617_v5 = vor.u32 %v1616_v36, %v1615_v52  ;;  %v756_v7 = vunpack.c.l.b16 %v711_v10  ;;  %v826_v36 = vor.u32 %v2786_v16, %v822_v38 }
 0x111   : > { %vm482_vm0 = vcmp.gt.f32.partialorder %v443_v49, 0.0  ;;  %v505_v19 = vmul.f32 0.1, %v443_v49  ;;  %2190 = vmatmul.msk.bf16.gmra.mxu1 %vm848_vm6, %v823_v0  ;;  %v1238_v0 = vor.u32 %v1237_v59, %v1236_v39 }
 0x112   : > { %v2801_v9 = vsel %vm1599_vm5, %v1613_v48, %v1617_v5 }
 0x113   : > { %v528_v30 = vsel %vm482_vm0, %v443_v49, %v505_v19  ;;  %v1239_v48 = vsel %vm1228_vm13, %v1234_v26, %v1238_v0 }
 0x114   : > { %v689_v40 = vmul.f32 %v2581_v1, %v528_v30 }
 0x116   : > { %v712_v25 = vpack.c.bf16 %v689_v40, %v689_v40  ;;  %v445_v13 = vpop.f32.mrf.mxu0 }
 0x117   : > { %v446_v8 = vadd.f32 %v2560_v29, %v445_v13  ;;  %v1241_v13 = vrot.slane %v2697_v4, 2 }
 0x118   : > { %v757_v49 = vunpack.c.l.b16 %v712_v25  ;;  %v1240_v25 = vrot.slane %v2700_v24, 1 }
 0x119   : > { %v506_v22 = vmul.f32 0.1, %v446_v8  ;;  %2247 = vmatmul.msk.bf16.gmra.mxu0 %vm848_vm6, %v2805_v33  ;;  %vm483_vm4 = vcmp.gt.f32.partialorder %v446_v8, 0.0 }
 0x11a   : > { %v2809_v1 = vpack.c.b16 %v757_v49, %v756_v7 }
 0x11b   : > { %v529_v19 = vsel %vm483_vm4, %v446_v8, %v506_v22 }
 0x11c   : > { %2225 = vmatmul.msk.bf16.gmra.mxu2 %vm848_vm6, %v1239_v48  ;;  %v2814_v41 = vshll.u32 %v2809_v1, 16  ;;  %v2817_v52 = vshrl.u32 %v2809_v1, 16  ;;  %v690_v39 = vmul.f32 %v2588_v34, %v529_v19  ;;  %v1394_v22 = vrot.slane %v2809_v1, 2 }
 0x11e   : > { %v447_v57 = vpop.f32.mrf.mxu0  ;;  %v830_v30 = vrot.slane %v2814_v41, 1  ;;  %v1619_v59 = vrot.slane %v2817_v52, 2  ;;  %v1620_v40 = vrot.slane %v2814_v41, 3  ;;  %v713_v34 = vpack.c.bf16 %v690_v39, %v690_v39 }
 0x11f   : > { %v448_v7 = vadd.f32 %v2560_v29, %v447_v57  ;;  %v2838_v24 = vsel %vm1382_vm14, %v1392_v46, %v1394_v22 }
 0x120   : > { %v831_v26 = vsel %vm771_vm11, %v826_v36, %v830_v30  ;;  %v1621_v8 = vor.u32 %v1620_v40, %v1619_v59  ;;  %v758_v6 = vunpack.c.l.b16 %v713_v34 }
 0x121   : > { %vm484_vm7 = vcmp.gt.f32.partialorder %v448_v7, 0.0  ;;  %v507_v10 = vmul.f32 0.1, %v448_v7  ;;  %2191 = vmatmul.msk.bf16.vlgmr.msra.gmra.mxu3 %vm848_vm6, %v831_v26  ;;  %2214 = vmatmul.msk.bf16.vlgmr.msrb.gmra.mxu1 %vm848_vm6, %v2634_v51  ;;  %v1242_v26 = vor.u32 %v1241_v13, %v1240_v25  ;;  %v834_v25 = vor.u32 %v2817_v52, %v830_v30 }
 0x122   : > { %v2834_v48 = vsel %vm1599_vm5, %v1617_v5, %v1621_v8  ;;  %v1244_v30 = vrot.slane %v2735_v45, 1 }
 0x123   : > { %v530_v38 = vsel %vm484_vm7, %v448_v7, %v507_v10  ;;  %v1243_v5 = vsel %vm1228_vm13, %v1238_v0, %v1242_v26 }
 0x124   : > { %v691_v49 = vmul.f32 %v2613_v23, %v530_v38 }
 0x126   : > { %v714_v19 = vpack.c.bf16 %v691_v49, %v691_v49  ;;  %v450_v57 = vpop.f32.mrf.mxu0 }
 0x127   : > { %v451_v36 = vadd.f32 %v2560_v29, %v450_v57 }
 0x128   : > { %v759_v7 = vunpack.c.l.b16 %v714_v19 }
 0x129   : > { %vm485_vm8 = vcmp.gt.f32.partialorder %v451_v36, 0.0  ;;  %v508_v4 = vmul.f32 0.1, %v451_v36  ;;  %2248 = vmatmul.msk.bf16.gmra.mxu0 %vm848_vm6, %v2838_v24 }
 0x12a   : > { %v2842_v23 = vpack.c.b16 %v759_v7, %v758_v6  ;;  %v2203_v7 = vld [vmem:[%s3409_s3 + $0x8] sm:$0xf] }
 0x12b   : > { %v531_v39 = vsel %vm485_vm8, %v451_v36, %v508_v4  ;;  %v657_v4 = vpop.permute.xlu1 %656 }
 0x12c   : > { %v692_v59 = vmul.f32 %v2646_v3, %v531_v39  ;;  %2226 = vmatmul.msk.bf16.gmra.mxu2 %vm848_vm6, %v1243_v5  ;;  %v2848_v10 = vshll.u32 %v2842_v23, 16  ;;  %v2851_v46 = vshrl.u32 %v2842_v23, 16  ;;  %v1245_v5 = vrot.slane %v2732_v11, 2 }
 0x12e   : > { %v715_v40 = vpack.c.bf16 %v692_v59, %v692_v59  ;;  %v452_v38 = vpop.f32.mrf.mxu0  ;;  %v838_v6 = vrot.slane %v2848_v10, 1  ;;  %v1623_v49 = vrot.slane %v2851_v46, 2  ;;  %v1624_v57 = vrot.slane %v2848_v10, 3 }
 0x12f   : > { %v453_v13 = vadd.f32 %v2560_v29, %v452_v38  ;;  %v964_v34 = vpop.f32.mrf.mxu2  ;;  %v1059_v59 = vsel %vm876_vm3, %v2203_v7, 0 }
 0x130   : > { %v760_v0 = vunpack.c.l.b16 %v715_v40  ;;  %v839_v3 = vsel %vm771_vm11, %v834_v25, %v838_v6  ;;  %v1625_v40 = vor.u32 %v1624_v57, %v1623_v49  ;;  %v1396_v25 = vrot.slane %v2842_v23, 2  ;;  %1068 = vmatpush.bf16.msra.mxu3 %v1059_v59  ;;  %v662_v59 = vpop.permute.xlu2 %661 }
 0x131   : > { %vm486_vm9 = vcmp.gt.f32.partialorder %v453_v13, 0.0  ;;  %v509_v19 = vmul.f32 0.1, %v453_v13  ;;  %2192 = vmatmul.msk.bf16.gmra.mxu3 %vm848_vm6, %v839_v3  ;;  %2215 = vmatmul.msk.bf16.gmra.mxu1 %vm848_vm6, %v2667_v56  ;;  %v2870_v3 = vrot.slane %v2842_v23, 1  ;;  %v842_v43 = vor.u32 %v2851_v46, %v838_v6 }
 0x132   : > { %v770_v36 = vpack.c.b16 %v760_v0, %v760_v0  ;;  %v2873_v62 = vsel %vm1599_vm5, %v1621_v8, %v1625_v40  ;;  %v2881_v7 = vsel %vm1382_vm14, %v1394_v22, %v1396_v25 }
 0x133   : > { %v532_v39 = vsel %vm486_vm9, %v453_v13, %v509_v19  ;;  %v1246_v19 = vor.u32 %v1245_v5, %v1244_v30 }
 0x134   : > { %v693_v38 = vmul.f32 %v657_v4, %v532_v39  ;;  %v1029_v45 = vrot.slane %v770_v36, 1  ;;  %v844_v4 = vshll.u32 %v770_v36, 16 }
 0x136   : > { %v716_v61 = vpack.c.bf16 %v693_v38, %v693_v38  ;;  %v455_v54 = vpop.f32.mrf.mxu0  ;;  %v2877_v13 = vsel %vm1011_vm10, %v2870_v3, %v1029_v45  ;;  %v1247_v45 = vsel %vm1228_vm13, %v1242_v26, %v1246_v19 }
 0x137   : > { %v456_v11 = vadd.f32 %v2560_v29, %v455_v54  ;;  %v966_v49 = vpop.f32.mrf.mxu2  ;;  %v846_v54 = vrot.slane %v844_v4, 1 }
 0x138   : > { %v1137_v57 = vunpack.c.l.b16 %v716_v61 }
 0x139   : > { %vm487_vm12 = vcmp.gt.f32.partialorder %v456_v11, 0.0  ;;  %v510_v39 = vmul.f32 0.1, %v456_v11  ;;  %2249 = vmatmul.msk.bf16.gmra.mxu0 %vm848_vm6, %v2881_v7  ;;  %v847_v26 = vsel %vm771_vm11, %v842_v43, %v846_v54  ;;  %v1248_v43 = vrot.slane %v2786_v16, 1 }
 0x13a   : > { %v2885_v8 = vpack.c.b16 %v1137_v57, %v760_v0  ;;  %v1249_v54 = vrot.slane %v2783_v15, 2 }
 0x13b   : > { %v533_v38 = vsel %vm487_vm12, %v456_v11, %v510_v39 }
 0x13c   : > { %v694_v53 = vmul.f32 %v662_v59, %v533_v38  ;;  %2227 = vmatmul.msk.bf16.gmra.mxu2 %vm848_vm6, %v1247_v45  ;;  %v3418_v61 = vshrl.u32 %v2885_v8, 16  ;;  %v3417_v22 = vshll.u32 %v2885_v8, 16  ;;  %v667_v38 = vpop.permute.xlu0 %666 }
 0x13e   : > { %v717_v30 = vpack.c.bf16 %v694_v53, %v694_v53  ;;  %v457_v36 = vpop.f32.mrf.mxu0  ;;  %v889_v5 = vpop.f32.mrf.mxu1  ;;  %v1627_v4 = vrot.slane %v3418_v61, 2  ;;  %v1628_v59 = vrot.slane %v3417_v22, 3 }
 0x13f   : > { %v458_v0 = vadd.f32 %v2560_v29, %v457_v36  ;;  %v2893_v57 = vadd.f32 %v964_v34, %v889_v5  ;;  %v969_v11 = vpop.f32.mrf.mxu2  ;;  %v1398_v36 = vrot.slane %v2885_v8, 2 }
 0x140   : > { %v1138_v39 = vunpack.c.l.b16 %v717_v30  ;;  %v1629_v34 = vor.u32 %v1628_v59, %v1627_v4  ;;  %v1250_v59 = vor.u32 %v1249_v54, %v1248_v43 }
 0x141   : > { %vm488_vm15 = vcmp.gt.f32.partialorder %v458_v0, 0.0  ;;  %v511_v53 = vmul.f32 0.1, %v458_v0  ;;  %2193 = vmatmul.msk.bf16.gmra.mxu3 %vm848_vm6, %v847_v26  ;;  %2216 = vmatmul.msk.bf16.gmra.mxu1 %vm848_vm6, %v2708_v18 }
 0x142   : > { %v2903_v6 = vpack.c.b16 %v1138_v39, %v1138_v39  ;;  %v2909_v5 = vsel %vm1599_vm5, %v1625_v40, %v1629_v34 }
 0x143   : > { %v534_v45 = vsel %vm488_vm15, %v458_v0, %v511_v53  ;;  %v2919_v53 = vsel %vm1382_vm14, %v1396_v25, %v1398_v36 }
 0x144   : > { %v695_v30 = vmul.f32 %v667_v38, %v534_v45  ;;  %v1400_v26 = vrot.slane %v2903_v6, 2  ;;  %v672_v45 = vpop.permute.xlu1 %671 }
 0x146   : > { %v718_v22 = vpack.c.bf16 %v695_v30, %v695_v30  ;;  %v460_v61 = vpop.f32.mrf.mxu0  ;;  %v891_v42 = vpop.f32.mrf.mxu1  ;;  %v2916_v16 = vsel %vm1382_vm14, %v1398_v36, %v1400_v26 }
 0x147   : > { %v461_v32 = vadd.f32 %v2560_v29, %v460_v61  ;;  %v2913_v4 = vadd.f32 %v966_v49, %v891_v42  ;;  %v971_v0 = vpop.f32.mrf.mxu2  ;;  %v1251_v42 = vsel %vm1228_vm13, %v1246_v19, %v1250_v59  ;;  %v3419_v61 = vrot.slane %v2885_v8, 3 }
 0x148   : > { %v1508_v15 = vunpack.c.l.b16 %v718_v22 }
 0x149   : > { %vm489_vm11 = vcmp.gt.f32.partialorder %v461_v32, 0.0  ;;  %v512_v40 = vmul.f32 0.1, %v461_v32  ;;  %2250 = vmatmul.msk.bf16.gmra.mxu0 %vm848_vm6, %v2919_v53 }
 0x14a   : > { %v2923_v38 = vpack.c.b16 %v1508_v15, %v1138_v39 }
 0x14b   : > { %v535_v29 = vsel %vm489_vm11, %v461_v32, %v512_v40 }
 0x14c   : > { %v696_v49 = vmul.f32 %v672_v45, %v535_v29  ;;  %2228 = vmatmul.msk.bf16.gmra.mxu2 %vm848_vm6, %v1251_v42  ;;  %v1769_v22 = vrot.slane %v2923_v38, 3  ;;  %v1632_v25 = vshrl.u32 %v2923_v38, 16  ;;  %v1635_v43 = vshll.u32 %v2923_v38, 16 }
 0x14e   : > { %v719_v54 = vpack.c.bf16 %v696_v49, %v696_v49  ;;  %v462_v30 = vpop.f32.mrf.mxu0  ;;  %v894_v26 = vpop.f32.mrf.mxu1  ;;  %v2934_v32 = vsel %vm1753_vm2, %v3419_v61, %v1769_v22  ;;  %v1634_v19 = vrot.slane %v1632_v25, 2  ;;  %v1637_v15 = vrot.slane %v1635_v43, 3 }
 0x14f   : > { %v2936_v39 = vadd.f32 %v969_v11, %v894_v26  ;;  %v974_v45 = vpop.f32.mrf.mxu2  ;;  %v1252_v49 = vrot.slane %v2817_v52, 1  ;;  %v1253_v30 = vrot.slane %v2814_v41, 2  ;;  %v1512_v11 = vrot.slane %v2923_v38, 2 }
 0x150   : > { %v1509_v40 = vunpack.c.l.b16 %v719_v54  ;;  %v1638_v29 = vor.u32 %v1637_v15, %v1634_v19 }
 0x151   : > { %2200 = vmatmul.msk.bf16.vlgmr.msrb.gmra.mxu3 %vm848_vm6, %v2778_v44  ;;  %2217 = vmatmul.msk.bf16.gmra.mxu1 %vm848_vm6, %v2749_v47  ;;  %v1254_v52 = vor.u32 %v1253_v30, %v1252_v49  ;;  %v1513_v41 = vsel %vm1382_vm14, %v1398_v36, %v1512_v11  ;;  %v2233_v36 = vld [vmem:[%s3409_s3 + $0x14] sm:$0xf] }
 0x152   : > { %v1511_v42 = vpack.c.b16 %v1509_v40, %v1509_v40  ;;  %v2945_v61 = vsel %vm1599_vm5, %v1629_v34, %v1638_v29 }
 0x154   : > { %v1771_v25 = vrot.slane %v1511_v42, 3  ;;  %v1641_v43 = vshrl.u32 %v1511_v42, 16  ;;  %v1644_v54 = vshll.u32 %v1511_v42, 16  ;;  %v1514_v30 = vrot.slane %v1511_v42, 2 }
 0x156   : > { %v464_v26 = vpop.f32.mrf.mxu0  ;;  %v896_v31 = vpop.f32.mrf.mxu1  ;;  %v2949_v21 = vsel %vm1753_vm2, %v1769_v22, %v1771_v25  ;;  %v1643_v20 = vrot.slane %v1641_v43, 2  ;;  %v1646_v19 = vrot.slane %v1644_v54, 3  ;;  %v1023_v22 = vrot.slane %v2778_v44, 1 }
 0x157   : > { %v2951_v15 = vadd.f32 %v971_v0, %v896_v31  ;;  %v976_v34 = vpop.f32.mrf.mxu2  ;;  %v1255_v26 = vsel %vm1228_vm13, %v1250_v59, %v1254_v52  ;;  %v3439_v0 = vrot.slane %v2727_v12, 1  ;;  %v1430_v59 = vsel %vm876_vm3, %v2233_v36, 0 }
 0x158   : > { %v1647_v40 = vor.u32 %v1646_v19, %v1643_v20  ;;  %1439 = vmatpush.bf16.msrb.mxu3 %v1430_v59  ;;  %v3440_v59 = vshrl.u32 %v2885_v8, 16 }
 0x159   : > { %2251 = vmatmul.msk.bf16.gmra.mxu0 %vm848_vm6, %v1513_v41  ;;  %v2966_v20 = vsel %vm1011_vm10, %v3439_v0, %v1023_v22 }
 0x15a   : > { %v2956_v38 = vsel %vm1599_vm5, %v1638_v29, %v1647_v40  ;;  %v1257_v29 = vrot.slane %v2848_v10, 2  ;;  %v2263_v40 = vld [vmem:[%s3409_s3 + $0x20] sm:$0xf] }
 0x15c   : > { %2229 = vmatmul.msk.bf16.gmra.mxu2 %vm848_vm6, %v1255_v26  ;;  %v2253_v26 = vld [vmem:[%s3409_s3 + $0x1c] sm:$0xf] }
 0x15d   : > { %v1677_v10 = vsel %vm876_vm3, %v2253_v26, 0 }
 0x15e   : > { %v465_v25 = vpop.f32.mrf.mxu0  ;;  %v899_v43 = vpop.f32.mrf.mxu1  ;;  %1686 = vmatpush.bf16.msra.mxu1 %v1677_v10  ;;  %v1273_v10 = vshll.u32 %v2903_v6, 16 }
 0x15f   : > { %v2961_v31 = vadd.f32 %v974_v45, %v899_v43  ;;  %v1256_v45 = vrot.slane %v2851_v46, 1  ;;  %v979_v49 = vpop.f32.mrf.mxu2  ;;  %v1515_v25 = vsel %vm1382_vm14, %v1512_v11, %v1514_v30  ;;  %v1801_v46 = vsel %vm876_vm3, %v2263_v40, 0 }
 0x160   : > { %1810 = vmatpush.bf16.msra.mxu2 %v1801_v46  ;;  %v1270_v46 = vshrl.u32 %v2903_v6, 16 }
 0x161   : > { %2201 = vmatmul.msk.bf16.gmra.mxu3 %vm848_vm6, %v2809_v1  ;;  %2218 = vmatmul.msk.bf16.gmra.mxu1 %vm848_vm6, %v2966_v20  ;;  %v1258_v41 = vor.u32 %v1257_v29, %v1256_v45  ;;  %v3441_v45 = vshll.u32 %v2885_v8, 16 }
 0x163   : > { %v1259_v42 = vsel %vm1228_vm13, %v1254_v52, %v1258_v41  ;;  %v1263_v52 = vrot.slane %v3440_v59, 1  ;;  %v1266_v29 = vrot.slane %v3441_v45, 2 }
 0x166   : > { %v901_v54 = vpop.f32.mrf.mxu1 }
 0x167   : > { %v2978_v19 = vadd.f32 %v976_v34, %v901_v54  ;;  %v1025_v34 = vrot.slane %v2809_v1, 1  ;;  %v981_v43 = vpop.f32.mrf.mxu2 }
 0x169   : > { %2252 = vmatmul.msk.bf16.gmra.mxu0 %vm848_vm6, %v1515_v25  ;;  %v2996_v11 = vsel %vm1011_vm10, %v1023_v22, %v1025_v34 }
 0x16c   : > { %2230 = vmatmul.msk.bf16.gmra.mxu2 %vm848_vm6, %v1259_v42  ;;  %v3016_v42 = vsel %vm1011_vm10, %v1025_v34, %v2870_v3  ;;  %v1141_v34 = vrot.slane %v2885_v8, 1 }
 0x16e   : > { %v904_v0 = vpop.f32.mrf.mxu1 }
 0x16f   : > { %v2993_v36 = vadd.f32 %v979_v49, %v904_v0  ;;  %v1267_v49 = vor.u32 %v1266_v29, %v1263_v52  ;;  %v984_v40 = vpop.f32.mrf.mxu2  ;;  %v1275_v0 = vrot.slane %v1273_v10, 2 }
 0x171   : > { %2202 = vmatmul.msk.bf16.gmra.mxu3 %vm848_vm6, %v2842_v23  ;;  %2219 = vmatmul.msk.bf16.gmra.mxu1 %vm848_vm6, %v2996_v11  ;;  %v1268_v22 = vsel %vm1228_vm13, %v1258_v41, %v1267_v49 }
 0x176   : > { %v906_v30 = vpop.f32.mrf.mxu1 }
 0x177   : > { %v3006_v54 = vadd.f32 %v981_v43, %v906_v30  ;;  %v986_v41 = vpop.f32.mrf.mxu2  ;;  %v1272_v43 = vrot.slane %v1270_v46, 1 }
 0x179   : > { %v1276_v45 = vor.u32 %v1275_v0, %v1272_v43 }
 0x17b   : > { %v1277_v29 = vsel %vm1228_vm13, %v1267_v49, %v1276_v45  ;;  %v1143_v49 = vrot.slane %v2903_v6, 1  ;;  %v3442_v45 = vrot.slane %v2727_v12, 3  ;;  %v1763_v12 = vrot.slane %v2809_v1, 3 }
 0x17c   : > { %2231 = vmatmul.msk.bf16.gmra.mxu2 %vm848_vm6, %v1268_v22  ;;  %v1765_v1 = vrot.slane %v2842_v23, 3 }
 0x17e   : > { %v909_v26 = vpop.f32.mrf.mxu1 }
 0x17f   : > { %v3010_v25 = vadd.f32 %v984_v40, %v909_v26  ;;  %v989_v30 = vpop.f32.mrf.mxu2 }
 0x181   : > { %2204 = vmatmul.msk.bf16.vlgmr.msra.gmra.mxu3 %vm848_vm6, %v2601_v58  ;;  %2220 = vmatmul.msk.bf16.gmra.mxu1 %vm848_vm6, %v3016_v42  ;;  %v1142_v58 = vsel %vm1011_vm10, %v2870_v3, %v1141_v34 }
 0x186   : > { %v911_v59 = vpop.f32.mrf.mxu1 }
 0x187   : > { %v3022_v52 = vadd.f32 %v986_v41, %v911_v59  ;;  %v991_v26 = vpop.f32.mrf.mxu2  ;;  %v1144_v41 = vsel %vm1011_vm10, %v1141_v34, %v1143_v49 }
 0x18c   : > { %2232 = vmatmul.msk.bf16.gmra.mxu2 %vm848_vm6, %v1277_v29 }
 0x18e   : > { %v914_v40 = vpop.f32.mrf.mxu1 }
 0x18f   : > { %v3027_v22 = vadd.f32 %v989_v30, %v914_v40  ;;  %v3045_v43 = vpop.f32.mrf.mxu2 }
 0x191   : > { %2205 = vmatmul.msk.bf16.gmra.mxu3 %vm848_vm6, %v2634_v51  ;;  %2221 = vmatmul.msk.bf16.gmra.mxu1 %vm848_vm6, %v1142_v58 }
 0x196   : > { %v916_v46 = vpop.f32.mrf.mxu1 }
 0x197   : > { %v3034_v10 = vadd.f32 %v991_v26, %v916_v46  ;;  %v3051_v6 = vpop.f32.mrf.mxu2 }
 0x19c   : > { %2264 = vmatmul.msk.bf16.vlgmr.msra.gmra.mxu2 %vm848_vm6, %v2670_v63 }
 0x1a1   : > { %2206 = vmatmul.msk.bf16.gmra.mxu3 %vm848_vm6, %v2667_v56  ;;  %2222 = vmatmul.msk.bf16.gmra.mxu1 %vm848_vm6, %v1144_v41  ;;  %v3055_v56 = vpop.f32.mrf.mxu1 }
 0x1a4   : > { %v919_v3 = vpop.f32.mrf.mxu3 }
 0x1a9   : > { %v3064_v59 = vpop.f32.mrf.mxu1 }
 0x1ac   : > { %v921_v51 = vpop.f32.mrf.mxu3  ;;  %2265 = vmatmul.msk.bf16.gmra.mxu2 %vm848_vm6, %v2711_v35  ;;  %v3061_v35 = vpop.f32.mrf.mxu2 }
 0x1b1   : > { %2207 = vmatmul.msk.bf16.gmra.mxu3 %vm848_vm6, %v2708_v18  ;;  %2254 = vmatmul.msk.bf16.vlgmr.msra.gmra.mxu1 %vm848_vm6, %v2678_v14  ;;  %v1761_v14 = vrot.slane %v2778_v44, 3 }
 0x1b3   : > { %v1762_v29 = vsel %vm1753_vm2, %v3442_v45, %v1761_v14  ;;  %v1764_v40 = vsel %vm1753_vm2, %v1761_v14, %v1763_v12 }
 0x1b4   : > { %v924_v63 = vpop.f32.mrf.mxu3 }
 0x1bc   : > { %v926_v0 = vpop.f32.mrf.mxu3  ;;  %2266 = vmatmul.msk.bf16.gmra.mxu2 %vm848_vm6, %v2756_v37  ;;  %v3069_v37 = vpop.f32.mrf.mxu2 }
 0x1c1   : > { %2208 = vmatmul.msk.bf16.gmra.mxu3 %vm848_vm6, %v2749_v47  ;;  %2255 = vmatmul.msk.bf16.gmra.mxu1 %vm848_vm6, %v2719_v50  ;;  %v3076_v47 = vpop.f32.mrf.mxu1 }
 0x1c4   : > { %v929_v18 = vpop.f32.mrf.mxu3  ;;  %v3080_v34 = vpop.f32.mrf.mxu2 }
 0x1cc   : > { %v931_v30 = vpop.f32.mrf.mxu3  ;;  %2267 = vmatmul.msk.bf16.gmra.mxu2 %vm848_vm6, %v1762_v29  ;;  %v3089_v46 = vpop.f32.mrf.mxu2  ;;  %v3443_v29 = vrot.slane %v2885_v8, 3 }
 0x1d1   : > { %2209 = vmatmul.msk.bf16.gmra.mxu3 %vm848_vm6, %v2966_v20  ;;  %2256 = vmatmul.msk.bf16.gmra.mxu1 %vm848_vm6, %v2770_v27  ;;  %v3087_v20 = vpop.f32.mrf.mxu1 }
 0x1d4   : > { %v994_v50 = vpop.f32.mrf.mxu3 }
 0x1d5   : > { %v3078_v44 = vadd.f32 %v994_v50, %v919_v3  ;;  %v3100_v3 = vpop.f32.mrf.mxu2  ;;  %v1768_v50 = vsel %vm1753_vm2, %v1765_v1, %v3443_v29 }
 0x1d9   : > { %v3098_v41 = vpop.f32.mrf.mxu1 }
 0x1dc   : > { %v996_v58 = vpop.f32.mrf.mxu3  ;;  %2268 = vmatmul.msk.bf16.gmra.mxu2 %vm848_vm6, %v1764_v40 }
 0x1dd   : > { %v3085_v26 = vadd.f32 %v996_v58, %v921_v51  ;;  %v1766_v51 = vsel %vm1753_vm2, %v1763_v12, %v1765_v1  ;;  %v3112_v23 = vpop.f32.mrf.mxu2 }
 0x1e1   : > { %2210 = vmatmul.msk.bf16.gmra.mxu3 %vm848_vm6, %v2996_v11  ;;  %2257 = vmatmul.msk.bf16.gmra.mxu1 %vm848_vm6, %v2801_v9  ;;  %v3110_v9 = vpop.f32.mrf.mxu1 }
 0x1e4   : > { %v999_v27 = vpop.f32.mrf.mxu3 }
 0x1e5   : > { %v3095_v49 = vadd.f32 %v999_v27, %v924_v63  ;;  %v3124_v40 = vpop.f32.mrf.mxu2 }
 0x1ec   : > { %v1001_v14 = vpop.f32.mrf.mxu3  ;;  %2269 = vmatmul.msk.bf16.gmra.mxu2 %vm848_vm6, %v1766_v51 }
 0x1ed   : > { %v3104_v45 = vadd.f32 %v1001_v14, %v926_v0  ;;  %v3120_v0 = vpop.f32.mrf.mxu1  ;;  %v3135_v58 = vpop.f32.mrf.mxu2 }
 0x1f1   : > { %2211 = vmatmul.msk.bf16.gmra.mxu3 %vm848_vm6, %v3016_v42  ;;  %2258 = vmatmul.msk.bf16.gmra.mxu1 %vm848_vm6, %v2834_v48 }
 0x1f4   : > { %v1004_v11 = vpop.f32.mrf.mxu3 }
 0x1f5   : > { %v3114_v63 = vadd.f32 %v1004_v11, %v929_v18  ;;  %v3133_v18 = vpop.f32.mrf.mxu1 }
 0x1fc   : > { %v1006_v12 = vpop.f32.mrf.mxu3  ;;  %2270 = vmatmul.msk.bf16.gmra.mxu2 %vm848_vm6, %v1768_v50 }
 0x1fd   : > { %v3122_v42 = vadd.f32 %v1006_v12, %v931_v30  ;;  %v3142_v1 = vpop.f32.mrf.mxu1 }
 0x201   : > { %2212 = vmatmul.msk.bf16.gmra.mxu3 %vm848_vm6, %v2877_v13  ;;  %2259 = vmatmul.msk.bf16.gmra.mxu1 %vm848_vm6, %v2873_v62  ;;  %v3148_v62 = vpop.f32.mrf.mxu2 }
 0x204   : > { %v1070_v48 = vpop.f32.mrf.mxu3 }
 0x205   : > { %v3131_v8 = vadd.f32 %v1070_v48, %v2893_v57  ;;  %v3153_v51 = vpop.f32.mrf.mxu1 }
 0x20c   : > { %v1072_v27 = vpop.f32.mrf.mxu3  ;;  %2271 = vmatmul.msk.bf16.gmra.mxu2 %vm848_vm6, %v2934_v32  ;;  %v3155_v32 = vpop.f32.mrf.mxu2 }
 0x20d   : > { %v3140_v30 = vadd.f32 %v1072_v27, %v2913_v4 }
 0x211   : > { %2234 = vmatmul.msk.bf16.vlgmr.msrb.gmra.mxu3 %vm848_vm6, %v2643_v2  ;;  %2260 = vmatmul.msk.bf16.gmra.mxu1 %vm848_vm6, %v2909_v5 }
 0x214   : > { %v1075_v13 = vpop.f32.mrf.mxu3 }
 0x215   : > { %v3151_v57 = vadd.f32 %v1075_v13, %v2936_v39  ;;  %v3169_v39 = vpop.f32.mrf.mxu1 }
 0x21c   : > { %v1077_v4 = vpop.f32.mrf.mxu3  ;;  %2272 = vmatmul.msk.bf16.gmra.mxu2 %vm848_vm6, %v2949_v21 }
 0x21d   : > { %v3160_v14 = vadd.f32 %v1077_v4, %v2951_v15  ;;  %v3174_v21 = vpop.f32.mrf.mxu1 }
 0x221   : > { %2235 = vmatmul.msk.bf16.gmra.mxu3 %vm848_vm6, %v2687_v60  ;;  %2261 = vmatmul.msk.bf16.gmra.mxu1 %vm848_vm6, %v2945_v61 }
 0x224   : > { %v1080_v2 = vpop.f32.mrf.mxu3 }
 0x225   : > { %v3167_v5 = vadd.f32 %v1080_v2, %v2961_v31  ;;  %v3183_v15 = vpop.f32.mrf.mxu1  ;;  %v3185_v31 = vpop.f32.mrf.mxu2 }
 0x22c   : > { %v1082_v11 = vpop.f32.mrf.mxu3 }
 0x22d   : > { %v3172_v29 = vadd.f32 %v1082_v11, %v2978_v19  ;;  %v3192_v12 = vpop.f32.mrf.mxu1  ;;  %v3197_v48 = vpop.f32.mrf.mxu2 }
 0x231   : > { %2236 = vmatmul.msk.bf16.gmra.mxu3 %vm848_vm6, %v2723_v28  ;;  %2262 = vmatmul.msk.bf16.gmra.mxu1 %vm848_vm6, %v2956_v38 }
 0x234   : > { %v1085_v60 = vpop.f32.mrf.mxu3 }
 0x235   : > { %v3181_v61 = vadd.f32 %v1085_v60, %v2993_v36  ;;  %v3202_v13 = vpop.f32.mrf.mxu1  ;;  %v3204_v4 = vpop.f32.mrf.mxu2 }
 0x236   : > { %3444 = vst [vmem:[#allocation19_spill] sm:$0xff] %v3202_v13 }
 0x237   : > { %3445 = vst [vmem:[#allocation20_spill] sm:$0xff] %v3204_v4 }
 0x23c   : > { %v1087_v50 = vpop.f32.mrf.mxu3 }
 0x23d   : > { %v3188_v19 = vadd.f32 %v1087_v50, %v3006_v54  ;;  %v3211_v2 = vpop.f32.mrf.mxu1 }
 0x23e   : > { %3446 = vst [vmem:[#allocation21_spill] sm:$0xff] %v3211_v2 }
 0x241   : > { %2237 = vmatmul.msk.bf16.gmra.mxu3 %vm848_vm6, %v2774_v55 }
 0x244   : > { %v1090_v28 = vpop.f32.mrf.mxu3 }
 0x245   : > { %v3195_v38 = vadd.f32 %v1090_v28, %v3010_v25  ;;  %v3213_v25 = vpop.f32.mrf.mxu2 }
 0x246   : > { %3447 = vst [vmem:[#allocation22_spill] sm:$0xff] %v3213_v25 }
 0x24c   : > { %v1092_v36 = vpop.f32.mrf.mxu3 }
 0x24d   : > { %v3200_v27 = vadd.f32 %v1092_v36, %v3022_v52  ;;  %v3220_v52 = vpop.f32.mrf.mxu1  ;;  %v3222_v50 = vpop.f32.mrf.mxu2 }
 0x24e   : > { %3448 = vst [vmem:[#allocation23_spill] sm:$0xff] %v3220_v52 }
 0x24f   : > { %3449 = vst [vmem:[#allocation24_spill] sm:$0xff] %v3222_v50 }
 0x251   : > { %2238 = vmatmul.msk.bf16.gmra.mxu3 %vm848_vm6, %v2805_v33 }
 0x254   : > { %v1095_v55 = vpop.f32.mrf.mxu3 }
 0x255   : > { %v3209_v54 = vadd.f32 %v1095_v55, %v3027_v22  ;;  %v3227_v22 = vpop.f32.mrf.mxu1  ;;  %v3232_v25 = vpop.f32.mrf.mxu2 }
 0x256   : > { %3450 = vst [vmem:[#allocation25_spill] sm:$0xff] %v3227_v22 }
 0x257   : > { %3451 = vst [vmem:[#allocation26_spill] sm:$0xff] %v3232_v25 }
 0x25c   : > { %v1097_v11 = vpop.f32.mrf.mxu3 }
 0x25d   : > { %v3216_v60 = vadd.f32 %v1097_v11, %v3034_v10  ;;  %v1688_v50 = vpop.f32.mrf.mxu1 }
 0x261   : > { %2239 = vmatmul.msk.bf16.gmra.mxu3 %vm848_vm6, %v2838_v24  ;;  %v1534_v24 = vpop.f32.mrf.mxu0 }
 0x264   : > { %v1100_v33 = vpop.f32.mrf.mxu3 }
 0x265   : > { %v3225_v28 = vadd.f32 %v1100_v33, %v3078_v44  ;;  %v1812_v44 = vpop.f32.mrf.mxu2 }
 0x26c   : > { %v1102_v36 = vpop.f32.mrf.mxu3 }
 0x26d   : > { %v3230_v55 = vadd.f32 %v1102_v36, %v3085_v26  ;;  %v1536_v26 = vpop.f32.mrf.mxu0  ;;  %v1690_v36 = vpop.f32.mrf.mxu1 }
 0x26e   : > { %v1814_v25 = vpop.f32.mrf.mxu2 }
 0x271   : > { %2240 = vmatmul.msk.bf16.gmra.mxu3 %vm848_vm6, %v2881_v7 }
 0x274   : > { %v1105_v10 = vpop.f32.mrf.mxu3 }
 0x275   : > { %v3237_v11 = vadd.f32 %v1105_v10, %v3095_v49  ;;  %v1539_v49 = vpop.f32.mrf.mxu0  ;;  %v1693_v10 = vpop.f32.mrf.mxu1 }
 0x276   : > { %v1817_v2 = vpop.f32.mrf.mxu2 }
 0x277   : > { %3452 = vst [vmem:[#allocation27_spill] sm:$0xff] %v3237_v11 }
 0x27c   : > { %v1107_v33 = vpop.f32.mrf.mxu3 }
 0x27d   : > { %v3240_v22 = vadd.f32 %v1107_v33, %v3104_v45  ;;  %v1208_v45 = vadd.f32 %v3055_v56, %v3131_v8  ;;  %v1695_v33 = vpop.f32.mrf.mxu1  ;;  %v3263_v56 = vld [vmem:[%s3411_s5] ss:$0 sm:$0xff] }
 0x27f   : > { %3453 = vst [vmem:[#allocation28_spill] sm:$0xff] %v3240_v22  ;;  %v1819_v22 = vpop.f32.mrf.mxu2 }
 0x281   : > { %2241 = vmatmul.msk.bf16.gmra.mxu3 %vm848_vm6, %v2919_v53  ;;  %v1541_v53 = vpop.f32.mrf.mxu0 }
 0x284   : > { %v1110_v7 = vpop.f32.mrf.mxu3 }
 0x285   : > { %v3245_v52 = vadd.f32 %v1110_v7, %v3114_v63  ;;  %v1362_v63 = vadd.f32 %v3045_v43, %v1208_v45  ;;  %v1698_v11 = vpop.f32.mrf.mxu1 }
 0x287   : > { %3454 = vst [vmem:[#allocation29_spill] sm:$0xff] %v3245_v52 }
 0x289   : > { %v1544_v8 = vpop.f32.mrf.mxu0 }
 0x28c   : > { %v1112_v4 = vpop.f32.mrf.mxu3 }
 0x28d   : > { %v3248_v13 = vadd.f32 %v1112_v4, %v3122_v42  ;;  %v1209_v42 = vadd.f32 %v3064_v59, %v3140_v30  ;;  %v1210_v59 = vadd.f32 %v3076_v47, %v3151_v57 }
 0x28f   : > { %3455 = vst [vmem:[#allocation30_spill] sm:$0xff] %v3248_v13  ;;  %v1363_v43 = vadd.f32 %v3051_v6, %v1209_v42  ;;  %v1364_v42 = vadd.f32 %v3061_v35, %v1210_v59 }
 0x291   : > { %2242 = vmatmul.msk.bf16.gmra.mxu3 %vm848_vm6, %v2916_v16 }
 0x294   : > { %v1441_v7 = vpop.f32.mrf.mxu3 }
 0x295   : > { %v1486_v52 = vadd.f32 %v1441_v7, %v1362_v63 }
 0x297   : > { %v1579_v4 = vadd.f32 %v1534_v24, %v1486_v52 }
 0x299   : > { %v1733_v13 = vadd.f32 %v1688_v50, %v1579_v4  ;;  %v1822_v50 = vpop.f32.mrf.mxu2  ;;  %v1546_v4 = vpop.f32.mrf.mxu0 }
 0x29b   : > { %v1857_v16 = vadd.f32 %v1812_v44, %v1733_v13 }
 0x29c   : > { %v1443_v45 = vpop.f32.mrf.mxu3 }
 0x29d   : > { %v1879_v63 = vadd.f32 %v3263_v56, %v1857_v16  ;;  %v1487_v7 = vadd.f32 %v1443_v45, %v1363_v43  ;;  %v1211_v16 = vadd.f32 %v3087_v20, %v3160_v14  ;;  %v1212_v20 = vadd.f32 %v3098_v41, %v3167_v5 }
 0x29e   : > { %v1213_v5 = vadd.f32 %v3110_v9, %v3172_v29  ;;  %v1214_v29 = vadd.f32 %v3120_v0, %v3181_v61  ;;  %v1215_v0 = vadd.f32 %v3133_v18, %v3188_v19  ;;  %v1216_v18 = vadd.f32 %v3142_v1, %v3195_v38 }
 0x29f   : > { %vm1897_vm2 = vcmp.gt.f32.partialorder %v1879_v63, 0.0  ;;  %v1915_v30 = vmul.f32 0.1, %v1879_v63  ;;  %v1580_v52 = vadd.f32 %v1536_v26, %v1487_v7  ;;  %v3456_v7 = vld [vmem:[#allocation2_spill] sm:$0xff]  ;;  %v1217_v1 = vadd.f32 %v3153_v51, %v3200_v27 }
 0x2a0   : > { %v1218_v27 = vadd.f32 %v3169_v39, %v3209_v54  ;;  %v1219_v54 = vadd.f32 %v3174_v21, %v3216_v60  ;;  %v1220_v21 = vadd.f32 %v3183_v15, %v3225_v28  ;;  %v1221_v15 = vadd.f32 %v3192_v12, %v3230_v55  ;;  %v3467_v12 = vld [vmem:[#allocation27_spill] sm:$0xff] }
 0x2a1   : > { %v1933_v6 = vsel %vm1897_vm2, %v1879_v63, %v1915_v30  ;;  %v1734_v13 = vadd.f32 %v1690_v36, %v1580_v52  ;;  %v1700_v36 = vpop.f32.mrf.mxu1  ;;  %v1365_v30 = vadd.f32 %v3069_v37, %v1211_v16  ;;  %v3468_v55 = vld [vmem:[#allocation19_spill] sm:$0xff] }
 0x2a2   : > { %v2026_v24 = vadd.f32 %v2463_v17, %v1933_v6 }
 0x2a3   : > { %v1858_v44 = vadd.f32 %v1814_v25, %v1734_v13  ;;  %v1824_v25 = vpop.f32.mrf.mxu2 }
 0x2a4   : > { %2044 = vst.msk [vmem:[%s3272_s8] sm:$0xff] %vm352_vm1, %v2026_v24  ;;  %v1446_v47 = vpop.f32.mrf.mxu3 }
 0x2a5   : > { %v1880_v57 = vadd.f32 %v3263_v56, %v1858_v44  ;;  %v1488_v26 = vadd.f32 %v1446_v47, %v1364_v42 }
 0x2a7   : > { %vm1898_vm3 = vcmp.gt.f32.partialorder %v1880_v57, 0.0  ;;  %v1916_v43 = vmul.f32 0.1, %v1880_v57  ;;  %v1581_v45 = vadd.f32 %v1539_v49, %v1488_v26 }
 0x2a9   : > { %v1934_v63 = vsel %vm1898_vm3, %v1880_v57, %v1916_v43  ;;  %v1735_v17 = vadd.f32 %v1693_v10, %v1581_v45  ;;  %v1549_v10 = vpop.f32.mrf.mxu0  ;;  %v1703_v42 = vpop.f32.mrf.mxu1  ;;  %v1366_v57 = vadd.f32 %v3080_v34, %v1212_v20 }
 0x2aa   : > { %v2027_v35 = vadd.f32 %v3456_v7, %v1934_v63 }
 0x2ab   : > { %v1859_v59 = vadd.f32 %v1817_v2, %v1735_v17  ;;  %v3457_v2 = vld [vmem:[#allocation3_spill] sm:$0xff]  ;;  %v1827_v26 = vpop.f32.mrf.mxu2 }
 0x2ac   : > { %2045 = vst.msk [vmem:[%s3272_s8 + $0x8] sm:$0xff] %vm352_vm1, %v2027_v35  ;;  %v1448_v52 = vpop.f32.mrf.mxu3  ;;  %v1367_v35 = vadd.f32 %v3089_v46, %v1213_v5 }
 0x2ad   : > { %v1881_v6 = vadd.f32 %v3263_v56, %v1859_v59  ;;  %v1489_v13 = vadd.f32 %v1448_v52, %v1365_v30 }
 0x2af   : > { %vm1899_vm6 = vcmp.gt.f32.partialorder %v1881_v6, 0.0  ;;  %v1917_v14 = vmul.f32 0.1, %v1881_v6  ;;  %v1582_v49 = vadd.f32 %v1541_v53, %v1489_v13 }
 0x2b1   : > { %v1935_v24 = vsel %vm1899_vm6, %v1881_v6, %v1917_v14  ;;  %v1736_v44 = vadd.f32 %v1695_v33, %v1582_v49  ;;  %v1551_v17 = vpop.f32.mrf.mxu0  ;;  %v1705_v59 = vpop.f32.mrf.mxu1  ;;  %v1368_v49 = vadd.f32 %v3100_v3, %v1214_v29 }
 0x2b2   : > { %v2028_v47 = vadd.f32 %v3457_v2, %v1935_v24 }
 0x2b3   : > { %v1860_v37 = vadd.f32 %v1819_v22, %v1736_v44  ;;  %v3458_v22 = vld [vmem:[#allocation4_spill] sm:$0xff]  ;;  %v1829_v9 = vpop.f32.mrf.mxu2 }
 0x2b4   : > { %2046 = vst.msk [vmem:[%s3272_s8 + $0x10] sm:$0xff] %vm352_vm1, %v2028_v47  ;;  %v1451_v16 = vpop.f32.mrf.mxu3 }
 0x2b5   : > { %v1882_v43 = vadd.f32 %v3263_v56, %v1860_v37  ;;  %v1490_v41 = vadd.f32 %v1451_v16, %v1366_v57  ;;  %v3460_v16 = vld [vmem:[#allocation6_spill] sm:$0xff] }
 0x2b7   : > { %vm1900_vm10 = vcmp.gt.f32.partialorder %v1882_v43, 0.0  ;;  %v1918_v53 = vmul.f32 0.1, %v1882_v43  ;;  %v1583_v33 = vadd.f32 %v1544_v8, %v1490_v41  ;;  %v1369_v41 = vadd.f32 %v3112_v23, %v1215_v0 }
 0x2b9   : > { %v1936_v45 = vsel %vm1900_vm10, %v1882_v43, %v1918_v53  ;;  %v1737_v63 = vadd.f32 %v1698_v11, %v1583_v33  ;;  %v1554_v24 = vpop.f32.mrf.mxu0  ;;  %v1708_v37 = vpop.f32.mrf.mxu1 }
 0x2ba   : > { %v2029_v7 = vadd.f32 %v3458_v22, %v1936_v45 }
 0x2bb   : > { %v1861_v34 = vadd.f32 %v1822_v50, %v1737_v63  ;;  %v3459_v50 = vld [vmem:[#allocation5_spill] sm:$0xff] }
 0x2bc   : > { %2047 = vst.msk [vmem:[%s3272_s8 + $0x18] sm:$0xff] %vm352_vm1, %v2029_v7  ;;  %v1453_v30 = vpop.f32.mrf.mxu3  ;;  %v3461_v7 = vld [vmem:[#allocation7_spill] sm:$0xff] }
 0x2bd   : > { %v1883_v52 = vadd.f32 %v3263_v56, %v1861_v34  ;;  %v1491_v6 = vadd.f32 %v1453_v30, %v1367_v35  ;;  %v1370_v35 = vadd.f32 %v3124_v40, %v1216_v18 }
 0x2bf   : > { %vm1901_vm14 = vcmp.gt.f32.partialorder %v1883_v52, 0.0  ;;  %v1919_v11 = vmul.f32 0.1, %v1883_v52  ;;  %v1584_v8 = vadd.f32 %v1546_v4, %v1491_v6 }
 0x2c1   : > { %v1937_v13 = vsel %vm1901_vm14, %v1883_v52, %v1919_v11  ;;  %v1738_v20 = vadd.f32 %v1700_v36, %v1584_v8  ;;  %v1832_v36 = vpop.f32.mrf.mxu2  ;;  %v1556_v45 = vpop.f32.mrf.mxu0 }
 0x2c2   : > { %v2030_v14 = vadd.f32 %v3459_v50, %v1937_v13 }
 0x2c3   : > { %v1862_v46 = vadd.f32 %v1824_v25, %v1738_v20  ;;  %v1371_v20 = vadd.f32 %v3135_v58, %v1217_v1 }
 0x2c4   : > { %2048 = vst.msk [vmem:[%s3272_s8 + $0x20] sm:$0xff] %vm352_vm1, %v2030_v14  ;;  %v1456_v44 = vpop.f32.mrf.mxu3 }
 0x2c5   : > { %v1884_v2 = vadd.f32 %v3263_v56, %v1862_v46  ;;  %v1492_v47 = vadd.f32 %v1456_v44, %v1368_v49 }
 0x2c7   : > { %vm1902_vm5 = vcmp.gt.f32.partialorder %v1884_v2, 0.0  ;;  %v1920_v61 = vmul.f32 0.1, %v1884_v2  ;;  %v1585_v4 = vadd.f32 %v1549_v10, %v1492_v47 }
 0x2c9   : > { %v1938_v57 = vsel %vm1902_vm5, %v1884_v2, %v1920_v61  ;;  %v1739_v25 = vadd.f32 %v1703_v42, %v1585_v4  ;;  %v1710_v42 = vpop.f32.mrf.mxu1  ;;  %v1372_v61 = vadd.f32 %v3148_v62, %v1218_v27 }
 0x2ca   : > { %v2031_v3 = vadd.f32 %v3460_v16, %v1938_v57 }
 0x2cb   : > { %v1863_v43 = vadd.f32 %v1827_v26, %v1739_v25  ;;  %v1834_v26 = vpop.f32.mrf.mxu2 }
 0x2cc   : > { %2049 = vst.msk [vmem:[%s3272_s8 + $0x28] sm:$0xff] %vm352_vm1, %v2031_v3  ;;  %v1458_v5 = vpop.f32.mrf.mxu3 }
 0x2cd   : > { %v1885_v53 = vadd.f32 %v3263_v56, %v1863_v43  ;;  %v1493_v33 = vadd.f32 %v1458_v5, %v1369_v41  ;;  %v3464_v5 = vld [vmem:[#allocation10_spill] sm:$0xff] }
 0x2cf   : > { %vm1903_vm13 = vcmp.gt.f32.partialorder %v1885_v53, 0.0  ;;  %v1921_v19 = vmul.f32 0.1, %v1885_v53  ;;  %v1586_v10 = vadd.f32 %v1551_v17, %v1493_v33  ;;  %v1373_v33 = vadd.f32 %v3155_v32, %v1219_v54 }
 0x2d1   : > { %v1939_v63 = vsel %vm1903_vm13, %v1885_v53, %v1921_v19  ;;  %v1740_v22 = vadd.f32 %v1705_v59, %v1586_v10  ;;  %v1559_v59 = vpop.f32.mrf.mxu0  ;;  %v1713_v8 = vpop.f32.mrf.mxu1 }
 0x2d2   : > { %v2032_v23 = vadd.f32 %v3461_v7, %v1939_v63 }
 0x2d3   : > { %v1864_v34 = vadd.f32 %v1829_v9, %v1740_v22  ;;  %v3462_v9 = vld [vmem:[#allocation8_spill] sm:$0xff]  ;;  %v1837_v50 = vpop.f32.mrf.mxu2 }
 0x2d4   : > { %2050 = vst.msk [vmem:[%s3272_s8 + $0x30] sm:$0xff] %vm352_vm1, %v2032_v23  ;;  %v1461_v30 = vpop.f32.mrf.mxu3  ;;  %v3465_v23 = vld [vmem:[#allocation11_spill] sm:$0xff] }
 0x2d5   : > { %v1886_v52 = vadd.f32 %v3263_v56, %v1864_v34  ;;  %v1494_v6 = vadd.f32 %v1461_v30, %v1370_v35  ;;  %v1374_v35 = vadd.f32 %v3185_v31, %v1220_v21 }
 0x2d7   : > { %vm1904_vm0 = vcmp.gt.f32.partialorder %v1886_v52, 0.0  ;;  %v1922_v38 = vmul.f32 0.1, %v1886_v52  ;;  %v1587_v17 = vadd.f32 %v1554_v24, %v1494_v6 }
 0x2d9   : > { %v1940_v29 = vsel %vm1904_vm0, %v1886_v52, %v1922_v38  ;;  %v1741_v11 = vadd.f32 %v1708_v37, %v1587_v17  ;;  %v1561_v47 = vpop.f32.mrf.mxu0  ;;  %v3463_v37 = vld [vmem:[#allocation9_spill] sm:$0xff]  ;;  %v1715_v4 = vpop.f32.mrf.mxu1 }
 0x2da   : > { %v2033_v13 = vadd.f32 %v3462_v9, %v1940_v29 }
 0x2db   : > { %v1865_v40 = vadd.f32 %v1832_v36, %v1741_v11  ;;  %v1839_v39 = vpop.f32.mrf.mxu2 }
 0x2dc   : > { %2051 = vst.msk [vmem:[%s3272_s8 + $0x38] sm:$0xff] %vm352_vm1, %v2033_v13  ;;  %v1463_v14 = vpop.f32.mrf.mxu3  ;;  %v1375_v13 = vadd.f32 %v3197_v48, %v1221_v15 }
 0x2dd   : > { %v1887_v46 = vadd.f32 %v3263_v56, %v1865_v40  ;;  %v1495_v51 = vadd.f32 %v1463_v14, %v1371_v20  ;;  %v1222_v14 = vadd.f32 %v3468_v55, %v3467_v12  ;;  %v3482_v55 = vld [vmem:[#allocation26_spill] sm:$0xff] }
 0x2df   : > { %vm1905_vm4 = vcmp.gt.f32.partialorder %v1887_v46, 0.0  ;;  %v1923_v49 = vmul.f32 0.1, %v1887_v46  ;;  %v1588_v24 = vadd.f32 %v1556_v45, %v1495_v51 }
 0x2e1   : > { %v1941_v44 = vsel %vm1905_vm4, %v1887_v46, %v1923_v49  ;;  %v1742_v2 = vadd.f32 %v1710_v42, %v1588_v24  ;;  %v1564_v45 = vpop.f32.mrf.mxu0  ;;  %v1718_v42 = vpop.f32.mrf.mxu1 }
 0x2e2   : > { %v2034_v0 = vadd.f32 %v3463_v37, %v1941_v44  ;;  %v3470_v37 = vld [vmem:[#allocation20_spill] sm:$0xff] }
 0x2e3   : > { %v1866_v58 = vadd.f32 %v1834_v26, %v1742_v2  ;;  %v1842_v22 = vpop.f32.mrf.mxu2  ;;  %v3469_v2 = vld [vmem:[#allocation13_spill] sm:$0xff] }
 0x2e4   : > { %2052 = vst.msk [vmem:[%s3272_s8 + $0x40] sm:$0xff] %vm352_vm1, %v2034_v0  ;;  %v1466_v36 = vpop.f32.mrf.mxu3  ;;  %v1376_v0 = vadd.f32 %v3470_v37, %v1222_v14 }
 0x2e5   : > { %v1888_v57 = vadd.f32 %v3263_v56, %v1866_v58  ;;  %v1496_v25 = vadd.f32 %v1466_v36, %v1372_v61 }
 0x2e7   : > { %vm1906_vm7 = vcmp.gt.f32.partialorder %v1888_v57, 0.0  ;;  %v1924_v16 = vmul.f32 0.1, %v1888_v57  ;;  %v1589_v3 = vadd.f32 %v1559_v59, %v1496_v25  ;;  %v3472_v25 = vld [vmem:[#allocation21_spill] sm:$0xff] }
 0x2e9   : > { %v1942_v43 = vsel %vm1906_vm7, %v1888_v57, %v1924_v16  ;;  %v1743_v41 = vadd.f32 %v1713_v8, %v1589_v3  ;;  %v1566_v1 = vpop.f32.mrf.mxu0  ;;  %v1720_v17 = vpop.f32.mrf.mxu1  ;;  %v3466_v8 = vld [vmem:[#allocation12_spill] sm:$0xff] }
 0x2ea   : > { %v2035_v53 = vadd.f32 %v3464_v5, %v1942_v43  ;;  %v3471_v57 = vld [vmem:[#allocation28_spill] sm:$0xff]  ;;  %v3473_v5 = vld [vmem:[#allocation14_spill] sm:$0xff] }
 0x2eb   : > { %v1867_v62 = vadd.f32 %v1837_v50, %v1743_v41  ;;  %v1844_v11 = vpop.f32.mrf.mxu2 }
 0x2ec   : > { %2053 = vst.msk [vmem:[%s3272_s8 + $0x48] sm:$0xff] %vm352_vm1, %v2035_v53  ;;  %v1468_v18 = vpop.f32.mrf.mxu3 }
 0x2ed   : > { %v1889_v19 = vadd.f32 %v3263_v56, %v1867_v62  ;;  %v1497_v10 = vadd.f32 %v1468_v18, %v1373_v33  ;;  %v3474_v33 = vld [vmem:[#allocation22_spill] sm:$0xff] }
 0x2ef   : > { %vm1907_vm8 = vcmp.gt.f32.partialorder %v1889_v19, 0.0  ;;  %v1925_v60 = vmul.f32 0.1, %v1889_v19  ;;  %v1590_v63 = vadd.f32 %v1561_v47, %v1497_v10 }
 0x2f1   : > { %v1943_v26 = vsel %vm1907_vm8, %v1889_v19, %v1925_v60  ;;  %v1744_v7 = vadd.f32 %v1715_v4, %v1590_v63  ;;  %v1569_v27 = vpop.f32.mrf.mxu0  ;;  %v1723_v44 = vpop.f32.mrf.mxu1  ;;  %v3475_v60 = vld [vmem:[#allocation29_spill] sm:$0xff]  ;;  %v3476_v63 = vld [vmem:[#allocation23_spill] sm:$0xff] }
 0x2f2   : > { %v2036_v32 = vadd.f32 %v3465_v23, %v1943_v26 }
 0x2f3   : > { %v1868_v34 = vadd.f32 %v1839_v39, %v1744_v7  ;;  %v1847_v58 = vpop.f32.mrf.mxu2  ;;  %v1223_v39 = vadd.f32 %v3472_v25, %v3471_v57  ;;  %v3484_v25 = vld [vmem:[#allocation18_spill] sm:$0xff] }
 0x2f4   : > { %2054 = vst.msk [vmem:[%s3272_s8 + $0x50] sm:$0xff] %vm352_vm1, %v2036_v32  ;;  %v1471_v30 = vpop.f32.mrf.mxu3 }
 0x2f5   : > { %v1890_v52 = vadd.f32 %v3263_v56, %v1868_v34  ;;  %v1498_v6 = vadd.f32 %v1471_v30, %v1374_v35  ;;  %v3477_v34 = vld [vmem:[#allocation15_spill] sm:$0xff] }
 0x2f7   : > { %vm1908_vm9 = vcmp.gt.f32.partialorder %v1890_v52, 0.0  ;;  %v1926_v28 = vmul.f32 0.1, %v1890_v52  ;;  %v1591_v38 = vadd.f32 %v1564_v45, %v1498_v6  ;;  %v1377_v45 = vadd.f32 %v3474_v33, %v1223_v39 }
 0x2f9   : > { %v1944_v59 = vsel %vm1908_vm9, %v1890_v52, %v1926_v28  ;;  %v1745_v29 = vadd.f32 %v1718_v42, %v1591_v38  ;;  %v1571_v41 = vpop.f32.mrf.mxu0  ;;  %v1725_v18 = vpop.f32.mrf.mxu1  ;;  %v3478_v52 = vld [vmem:[#allocation24_spill] sm:$0xff] }
 0x2fa   : > { %v2037_v31 = vadd.f32 %v3466_v8, %v1944_v59  ;;  %v3479_v59 = vld [vmem:[#allocation30_spill] sm:$0xff] }
 0x2fb   : > { %v1869_v9 = vadd.f32 %v1842_v22, %v1745_v29  ;;  %v1849_v21 = vpop.f32.mrf.mxu2  ;;  %v1224_v22 = vadd.f32 %v3476_v63, %v3475_v60  ;;  %v3480_v29 = vld [vmem:[#allocation25_spill] sm:$0xff] }
 0x2fc   : > { %2055 = vst.msk [vmem:[%s3272_s8 + $0x58] sm:$0xff] %vm352_vm1, %v2037_v31  ;;  %v1473_v40 = vpop.f32.mrf.mxu3 }
 0x2fd   : > { %v1891_v20 = vadd.f32 %v3263_v56, %v1869_v9  ;;  %v1499_v50 = vadd.f32 %v1473_v40, %v1375_v13  ;;  %v1378_v6 = vadd.f32 %v3478_v52, %v1224_v22 }
 0x2ff   : > { %vm1909_vm12 = vcmp.gt.f32.partialorder %v1891_v20, 0.0  ;;  %v1927_v46 = vmul.f32 0.1, %v1891_v20  ;;  %v1592_v51 = vadd.f32 %v1566_v1, %v1499_v50 }
 0x301   : > { %v1945_v49 = vsel %vm1909_vm12, %v1891_v20, %v1927_v46  ;;  %v1746_v24 = vadd.f32 %v1720_v17, %v1592_v51  ;;  %v1574_v1 = vpop.f32.mrf.mxu0  ;;  %v1728_v17 = vpop.f32.mrf.mxu1  ;;  %v3481_v20 = vld [vmem:[#allocation16_spill] sm:$0xff] }
 0x302   : > { %v2038_v47 = vadd.f32 %v3469_v2, %v1945_v49 }
 0x303   : > { %v1870_v48 = vadd.f32 %v1844_v11, %v1746_v24  ;;  %v1225_v11 = vadd.f32 %v3480_v29, %v3479_v59  ;;  %v1852_v9 = vpop.f32.mrf.mxu2 }
 0x304   : > { %2056 = vst.msk [vmem:[%s3272_s8 + $0x60] sm:$0xff] %vm352_vm1, %v2038_v47  ;;  %v1476_v61 = vpop.f32.mrf.mxu3 }
 0x305   : > { %v1892_v4 = vadd.f32 %v3263_v56, %v1870_v48  ;;  %v1500_v36 = vadd.f32 %v1476_v61, %v1376_v0  ;;  %v1379_v14 = vadd.f32 %v3482_v55, %v1225_v11  ;;  %v3483_v0 = vld [vmem:[#allocation17_spill] sm:$0xff] }
 0x307   : > { %vm1910_vm15 = vcmp.gt.f32.partialorder %v1892_v4, 0.0  ;;  %v1928_v54 = vmul.f32 0.1, %v1892_v4  ;;  %v1593_v16 = vadd.f32 %v1569_v27, %v1500_v36 }
 0x309   : > { %v1946_v3 = vsel %vm1910_vm15, %v1892_v4, %v1928_v54  ;;  %v1747_v43 = vadd.f32 %v1723_v44, %v1593_v16  ;;  %v1576_v49 = vpop.f32.mrf.mxu0  ;;  %v1730_v2 = vpop.f32.mrf.mxu1 }
 0x30a   : > { %v2039_v53 = vadd.f32 %v3473_v5, %v1946_v3 }
 0x30b   : > { %v1871_v62 = vadd.f32 %v1847_v58, %v1747_v43  ;;  %v1854_v37 = vpop.f32.mrf.mxu2 }
 0x30c   : > { %2057 = vst.msk [vmem:[%s3272_s8 + $0x68] sm:$0xff] %vm352_vm1, %v2039_v53  ;;  %v1478_v19 = vpop.f32.mrf.mxu3 }
 0x30d   : > { %v1893_v10 = vadd.f32 %v3263_v56, %v1871_v62  ;;  %v1501_v42 = vadd.f32 %v1478_v19, %v1377_v45 }
 0x30f   : > { %vm1911_vm11 = vcmp.gt.f32.partialorder %v1893_v10, 0.0  ;;  %v1929_v26 = vmul.f32 0.1, %v1893_v10  ;;  %v1594_v7 = vadd.f32 %v1571_v41, %v1501_v42 }
 0x311   : > { %v1947_v23 = vsel %vm1911_vm11, %v1893_v10, %v1929_v26  ;;  %v1748_v32 = vadd.f32 %v1725_v18, %v1594_v7 }
 0x312   : > { %v2040_v35 = vadd.f32 %v3477_v34, %v1947_v23 }
 0x313   : > { %v1872_v30 = vadd.f32 %v1849_v21, %v1748_v32 }
 0x314   : > { %2058 = vst.msk [vmem:[%s3272_s8 + $0x70] sm:$0xff] %vm352_vm1, %v2040_v35  ;;  %v1481_v15 = vpop.f32.mrf.mxu3 }
 0x315   : > { %v1894_v28 = vadd.f32 %v3263_v56, %v1872_v30  ;;  %v1502_v38 = vadd.f32 %v1481_v15, %v1378_v6 }
 0x317   : > { %vm1912_vm2 = vcmp.gt.f32.partialorder %v1894_v28, 0.0  ;;  %v1930_v8 = vmul.f32 0.1, %v1894_v28  ;;  %v1595_v31 = vadd.f32 %v1574_v1, %v1502_v38 }
 0x319   : > { %v1948_v13 = vsel %vm1912_vm2, %v1894_v28, %v1930_v8  ;;  %v1749_v40 = vadd.f32 %v1728_v17, %v1595_v31 }
 0x31a   : > { %v2041_v50 = vadd.f32 %v3481_v20, %v1948_v13 }
 0x31b   : > { %v1873_v12 = vadd.f32 %v1852_v9, %v1749_v40 }
 0x31c   : > { %2059 = vst.msk [vmem:[%s3272_s8 + $0x78] sm:$0xff] %vm352_vm1, %v2041_v50  ;;  %v1483_v46 = vpop.f32.mrf.mxu3 }
 0x31d   : > { %v1895_v51 = vadd.f32 %v3263_v56, %v1873_v12  ;;  %v1503_v27 = vadd.f32 %v1483_v46, %v1379_v14 }
 0x31f   : > { %vm1913_vm3 = vcmp.gt.f32.partialorder %v1895_v51, 0.0  ;;  %v1931_v24 = vmul.f32 0.1, %v1895_v51  ;;  %v1596_v44 = vadd.f32 %v1576_v49, %v1503_v27 }
 0x321   : > { %v1949_v47 = vsel %vm1913_vm3, %v1895_v51, %v1931_v24  ;;  %v1750_v48 = vadd.f32 %v1730_v2, %v1596_v44 }
 0x322   : > { %v2042_v58 = vadd.f32 %v3483_v0, %v1949_v47 }
 0x323   : > { %v1874_v61 = vadd.f32 %v1854_v37, %v1750_v48 }
 0x324   : > { %2060 = vst.msk [vmem:[%s3272_s8 + $0x80] sm:$0xff] %vm352_vm1, %v2042_v58 }
 0x325   : > { %v1896_v4 = vadd.f32 %v3263_v56, %v1874_v61 }
 0x327   : > { %vm1914_vm6 = vcmp.gt.f32.partialorder %v1896_v4, 0.0  ;;  %v1932_v36 = vmul.f32 0.1, %v1896_v4 }
 0x329   : > { %v1950_v57 = vsel %vm1914_vm6, %v1896_v4, %v1932_v36 }
 0x32a   : > { %v2043_v39 = vadd.f32 %v3484_v25, %v1950_v57 }
 0x32c   : > { %2061 = vst.msk [vmem:[%s3272_s8 + $0x88] sm:$0xff] %vm352_vm1, %v2043_v39 }
 0x32d PF: > { %s16_s25 = sadd.s32 1, %s2365_s25   ;;  %s3485_s21 = smov %s2357_s23 }
 0x32e   : > { %p13_p8 = scmp.ge.s32.totalorder %s16_s25, 6   ;;  %s3486_s22 = smov %s2361_s24 }
 0x32f   : > { %s3487_s23 = smov %s3490_s26  ;;  %s3488_s24 = smov %s3494_s27 }
 0x330   :  { %15 = sbr.rel (!%p13_p8) target bundleno = 3 (0x3), region = 85 }

</bundles_post_ra>
